<compile_context>
chip_gen: v7x
topology: tpu7x:2x2x1
jax: 0.10.0
libtpu: 0.0.40
codegen_flags: <defaults>
</compile_context>

<pallas_src>
import math
import functools

import jax
import jax.numpy as jnp
from jax import lax
from jax.experimental import pallas as pl
from jax.experimental.pallas import tpu as pltpu

MATMUL_DTYPE = jnp.bfloat16   # MXU-native on v6e/v7x; halves weight DMA/VMEM bytes.


# ------------------------------------------------------------------ kernel ---

def transformer_encoder_kernel(vl_ref,     # SMEM (B,) i32   valid lens (scalar prefetch)
                               x_ref,      # (1, S, H) f32   embedded + pos-encoded input
                               wqkv_ref,   # (L, H, 3H) bf16 fused Q|K|V (1/sqrt(dh) folded into Q)
                               wo_ref,     # (L, H, H)  bf16
                               w1_ref,     # (L, H, F)  bf16
                               w2_ref,     # (L, F, H)  bf16
                               vecs_ref,   # (L, 8, max(H,F)) f32 packed LN/bias vectors
                               out_ref,    # (1, S, H) f32
                               attn_ref,   # (L, 1, nh*S, S) f32
                               s_scr,      # VMEM (nh*S, S) f32 score slab scratch
                               *, num_heads, num_layers, hidden, ffn_hidden, seq_len):
    H, F, nh, S = hidden, ffn_hidden, num_heads, seq_len
    dh = H // nh
    mm = MATMUL_DTYPE

    b = pl.program_id(0)
    vlen = vl_ref[b]
    # Key mask built in-kernel from one SMEM scalar (no HBM mask DMA).
    key_ok = lax.broadcasted_iota(jnp.int32, (nh * S, S), 1) < vlen

    hs = x_ref[0]                                  # (S, H) f32 — resident across layers

    for l in range(num_layers):                    # static unroll; weights already in VMEM
        wqkv = wqkv_ref[l]                         # (H, 3H) bf16
        wo = wo_ref[l]                             # (H, H)  bf16
        w1 = w1_ref[l]                             # (H, F)  bf16
        w2 = w2_ref[l]                             # (F, H)  bf16
        vecs = vecs_ref[l]                         # (8, max(H,F)) f32
        ln1_g, ln1_b = vecs[0:1, :H], vecs[1:2, :H]
        b1, b2 = vecs[2:3, :F], vecs[3:4, :H]
        ln2_g, ln2_b = vecs[4:5, :H], vecs[5:6, :H]

        # --- fused Q/K/V projection (use_bias=False); scale pre-folded into Q ---
        qkv = jnp.dot(hs.astype(mm), wqkv, preferred_element_type=jnp.float32)   # (S, 3H)
        qkv_b = qkv.astype(mm)

        # --- per-head scores written straight into the VMEM slab (no concatenate) ---
        for h in range(nh):
            q_h = qkv_b[:, h * dh:(h + 1) * dh]
            k_h = qkv_b[:, H + h * dh:H + (h + 1) * dh]
            s_scr[h * S:(h + 1) * S, :] = lax.dot_general(
                q_h, k_h, (((1,), (1,)), ((), ())),
                preferred_element_type=jnp.float32)                               # (S, S)

        # --- one masked softmax over all heads ---
        s_all = jnp.where(key_ok, s_scr[...], jnp.float32(-1.0e6))   # matches value=-1000000.0
        s_all = s_all - jnp.max(s_all, axis=-1, keepdims=True)
        e = jnp.exp(s_all)
        p_all = e * pl.reciprocal(jnp.sum(e, axis=-1, keepdims=True), approx=True)
        attn_ref[l, 0] = p_all                     # one contiguous store per layer (block-diag only)

        # --- head outputs folded directly through W_o rows (no concatenate) ---
        p_b = p_all.astype(mm)
        att_out = jnp.zeros((S, H), jnp.float32)
        for h in range(nh):
            v_h = qkv_b[:, 2 * H + h * dh:2 * H + (h + 1) * dh]
            o_h = jnp.dot(p_b[h * S:(h + 1) * S, :], v_h,
                          preferred_element_type=jnp.float32)                      # (S, dh)
            att_out = att_out + jnp.dot(o_h.astype(mm), wo[h * dh:(h + 1) * dh, :],
                                        preferred_element_type=jnp.float32)        # (S, H)

        # --- AddNorm 1 (LayerNorm over last dim, eps=1e-5) ---
        y = att_out + hs
        mu = jnp.mean(y, axis=-1, keepdims=True)
        var = jnp.mean((y - mu) ** 2, axis=-1, keepdims=True)
        y = (y - mu) * lax.rsqrt(var + 1e-5) * ln1_g + ln1_b

        # --- position-wise FFN ---
        hid = jnp.maximum(jnp.dot(y.astype(mm), w1, preferred_element_type=jnp.float32) + b1, 0.0)
        ffn = jnp.dot(hid.astype(mm), w2, preferred_element_type=jnp.float32) + b2

        # --- AddNorm 2 ---
        z = ffn + y
        mu2 = jnp.mean(z, axis=-1, keepdims=True)
        var2 = jnp.mean((z - mu2) ** 2, axis=-1, keepdims=True)
        hs = (z - mu2) * lax.rsqrt(var2 + 1e-5) * ln2_g + ln2_b

    out_ref[0] = hs


# ----------------------------------------------------------------- wrapper ---

def make_positional_encoding(max_len, H):
    pos = jnp.arange(max_len, dtype=jnp.float32)[:, None]
    div = jnp.power(10000.0, jnp.arange(0, H, 2, dtype=jnp.float32) / H)
    X = pos / div
    P = jnp.zeros((max_len, H), jnp.float32)
    P = P.at[:, 0::2].set(jnp.sin(X))
    P = P.at[:, 1::2].set(jnp.cos(X))
    return P[None]                                   # (1, max_len, H)


def pack_encoder_params(params, num_heads):
    """One-time parameter packing, hoisted out of the forward path."""
    H = params["embedding"].shape[1]
    blocks = params["blocks"]
    F = blocks[0]["w1"].shape[1]
    dh = H // num_heads
    maxHF = max(H, F)
    inv_sqrt_d = 1.0 / math.sqrt(dh)

    def pad_row(v):                                  # (1, X) -> (1, maxHF)
        return jnp.pad(v, ((0, 0), (0, maxHF - v.shape[1])))

    wqkv = jnp.stack([jnp.concatenate([p["wq"] * inv_sqrt_d, p["wk"], p["wv"]], axis=1)
                      for p in blocks]).astype(MATMUL_DTYPE)          # (L, H, 3H)
    wo = jnp.stack([p["wo"] for p in blocks]).astype(MATMUL_DTYPE)    # (L, H, H)
    w1 = jnp.stack([p["w1"] for p in blocks]).astype(MATMUL_DTYPE)    # (L, H, F)
    w2 = jnp.stack([p["w2"] for p in blocks]).astype(MATMUL_DTYPE)    # (L, F, H)
    vecs = jnp.stack([
        jnp.concatenate([pad_row(p["ln1_g"]), pad_row(p["ln1_b"]),
                         pad_row(p["b1"]), pad_row(p["b2"]),
                         pad_row(p["ln2_g"]), pad_row(p["ln2_b"]),
                         jnp.zeros((2, maxHF), jnp.float32)], axis=0)
        for p in blocks])                                             # (L, 8, maxHF)
    return {"embedding": params["embedding"].astype(jnp.float32),
            "P": params["P"].astype(jnp.float32),
            "wqkv": wqkv, "wo": wo, "w1": w1, "w2": w2, "vecs": vecs,
            "H": H, "F": F, "L": len(blocks), "nh": num_heads}


def transformer_encoder_forward(tokens, valid_lens, packed):
    H, F, L, nh = packed["H"], packed["F"], packed["L"], packed["nh"]
    B, S = tokens.shape

    # embedding * sqrt(H) + positional encoding (dropout = identity in eval)
    # TODO(synk): embedding gather / positional add stay in plain JAX (no natural tile at this size).
    x = packed["embedding"][tokens] * jnp.float32(math.sqrt(H))
    x = (x + packed["P"][:, :S, :]).astype(jnp.float32)               # (B, S, H)
    vl = valid_lens.astype(jnp.int32)

    kern = functools.partial(transformer_encoder_kernel,
                             num_heads=nh, num_layers=L, hidden=H,
                             ffn_hidden=F, seq_len=S)

    grid_spec = pltpu.PrefetchScalarGridSpec(
        num_scalar_prefetch=1,            # valid_lens -> SMEM; mask is built in-kernel
        grid=(B,),                        # one step per batch example
        in_specs=[
            pl.BlockSpec((1, S, H), lambda b, vl_ref: (b, 0, 0)),               # x
            pl.BlockSpec(packed["wqkv"].shape, lambda b, vl_ref: (0, 0, 0)),     # weights stay resident
            pl.BlockSpec(packed["wo"].shape, lambda b, vl_ref: (0, 0, 0)),
            pl.BlockSpec(packed["w1"].shape, lambda b, vl_ref: (0, 0, 0)),
            pl.BlockSpec(packed["w2"].shape, lambda b, vl_ref: (0, 0, 0)),
            pl.BlockSpec(packed["vecs"].shape, lambda b, vl_ref: (0, 0, 0)),
        ],
        out_specs=[
            pl.BlockSpec((1, S, H), lambda b, vl_ref: (b, 0, 0)),
            pl.BlockSpec((L, 1, nh * S, S), lambda b, vl_ref: (0, b, 0, 0)),
        ],
        scratch_shapes=[pltpu.VMEM((nh * S, S), jnp.float32)],
    )

    out, attn_raw = pl.pallas_call(
        kern,
        grid_spec=grid_spec,
        out_shape=(jax.ShapeDtypeStruct((B, S, H), jnp.float32),
                   jax.ShapeDtypeStruct((L, B, nh * S, S), jnp.float32)),
        compiler_params=pltpu.CompilerParams(
            dimension_semantics=("parallel",)),   # 2-way batch split on v7x; single-core elsewhere
    )(vl, x, packed["wqkv"], packed["wo"], packed["w1"], packed["w2"], packed["vecs"])

    attn = attn_raw.reshape(L, B, nh, S, S)
    attn_weights = [attn[l] for l in range(L)]    # per layer: (B, nh, S, S)
    return out, attn_weights


# --------------------------------------------------------- pure-JAX reference

def reference_forward(tokens, valid_lens, params, num_heads):
    H = params["embedding"].shape[1]
    x = params["embedding"][tokens] * math.sqrt(H)
    x = x + params["P"][:, :tokens.shape[1], :]
    B, S, _ = x.shape
    dh = H // num_heads

    def ln(z, g, b):
        mu = z.mean(-1, keepdims=True)
        var = ((z - mu) ** 2).mean(-1, keepdims=True)
        return (z - mu) / jnp.sqrt(var + 1e-5) * g[0] + b[0]

    for p in params["blocks"]:
        q = x @ p["wq"]; k = x @ p["wk"]; v = x @ p["wv"]
        qh = q.reshape(B, S, num_heads, dh).transpose(0, 2, 1, 3)
        kh = k.reshape(B, S, num_heads, dh).transpose(0, 2, 1, 3)
        vh = v.reshape(B, S, num_heads, dh).transpose(0, 2, 1, 3)
        scores = jnp.einsum("bhqd,bhkd->bhqk", qh, kh) / math.sqrt(dh)
        mask = (jnp.arange(S)[None, None, None, :] <
                valid_lens[:, None, None, None])
        scores = jnp.where(mask, scores, -1.0e6)
        attn = jax.nn.softmax(scores, axis=-1)
        o = jnp.einsum("bhqk,bhkd->bhqd", attn, vh)
        o = o.transpose(0, 2, 1, 3).reshape(B, S, H) @ p["wo"]
        y = ln(o + x, p["ln1_g"], p["ln1_b"])
        f = jnp.maximum(y @ p["w1"] + p["b1"][0], 0.0) @ p["w2"] + p["b2"][0]
        x = ln(f + y, p["ln2_g"], p["ln2_b"])
    return x


# -------------------------------------------------------------------- main ---

if __name__ == "__main__":
    # small config consistent with the module (norm_shape = [32] -> H = 32)
    vocab_size = 50
    H = 32            # num_hiddens == key/query/value size == ffn_num_input
    F = 64            # ffn_num_hiddens
    num_heads = 4
    num_layers = 2
    B, S = 2, 8

    key = jax.random.PRNGKey(0)

    def init_block(k):
        ks = jax.random.split(k, 6)
        s = 0.02
        return {
            "wq": jax.random.normal(ks[0], (H, H), jnp.float32) * s,
            "wk": jax.random.normal(ks[1], (H, H), jnp.float32) * s,
            "wv": jax.random.normal(ks[2], (H, H), jnp.float32) * s,
            "wo": jax.random.normal(ks[3], (H, H), jnp.float32) * s,
            "ln1_g": jnp.ones((1, H), jnp.float32),
            "ln1_b": jnp.zeros((1, H), jnp.float32),
            "w1": jax.random.normal(ks[4], (H, F), jnp.float32) * s,
            "b1": jnp.zeros((1, F), jnp.float32),
            "w2": jax.random.normal(ks[5], (F, H), jnp.float32) * s,
            "b2": jnp.zeros((1, H), jnp.float32),
            "ln2_g": jnp.ones((1, H), jnp.float32),
            "ln2_b": jnp.zeros((1, H), jnp.float32),
        }

    key, k_emb, *k_blocks = jax.random.split(key, 2 + num_layers)
    params = {
        "embedding": jax.random.normal(k_emb, (vocab_size, H), jnp.float32),
        "P": make_positional_encoding(1000, H),
        "blocks": [init_block(k) for k in k_blocks],
    }

    key, k_tok = jax.random.split(key)
    tokens = jax.random.randint(k_tok, (B, S), 0, vocab_size, dtype=jnp.int32)
    valid_lens = jnp.array([5, 8], dtype=jnp.int32)   # per-batch valid lengths

    packed = pack_encoder_params(params, num_heads)   # one-time packing (hoisted)

    out, attn_weights = transformer_encoder_forward(tokens, valid_lens, packed)
    out = jax.block_until_ready(out)

    ref = reference_forward(tokens, valid_lens, params, num_heads)
    assert out.shape == (B, S, H)
    assert all(a.shape == (B, num_heads, S, S) for a in attn_weights)
    assert jnp.allclose(out, ref, rtol=1e-2, atol=1e-2), "mismatch vs JAX reference"

    print("KERNEL_OK")
</pallas_src>

<mosaic_0001>
module attributes {stable_mosaic.version = 11 : i64} {
  func.func @transformer_encoder_kernel(%arg0: i32, %arg1: memref<2xi32, #tpu.memory_space<smem>>, %arg2: memref<1x8x32xf32, #tpu.memory_space<vmem>>, %arg3: memref<2x32x96xbf16, #tpu.memory_space<vmem>>, %arg4: memref<2x32x32xbf16, #tpu.memory_space<vmem>>, %arg5: memref<2x32x64xbf16, #tpu.memory_space<vmem>>, %arg6: memref<2x64x32xbf16, #tpu.memory_space<vmem>>, %arg7: memref<2x8x64xf32, #tpu.memory_space<vmem>>, %arg8: memref<1x8x32xf32, #tpu.memory_space<vmem>>, %arg9: memref<2x1x32x8xf32, #tpu.memory_space<vmem>>, %arg10: memref<32x8xf32, #tpu.memory_space<vmem>>) attributes {dimension_semantics = [#tpu.dimension_semantics<parallel>], iteration_bounds = array<i64: 2>, scalar_prefetch = 1 : i64, scratch_operands = 1 : i64, tpu.core_type = #tpu.core_type<tc>, window_params = [{transform_indices = @transform_0, window_bounds = array<i64: 1, 8, 32>}, {pipeline_mode = #tpu.pipeline_mode<synchronous>, transform_indices = @transform_1, window_bounds = array<i64: 2, 32, 96>}, {pipeline_mode = #tpu.pipeline_mode<synchronous>, transform_indices = @transform_2, window_bounds = array<i64: 2, 32, 32>}, {pipeline_mode = #tpu.pipeline_mode<synchronous>, transform_indices = @transform_3, window_bounds = array<i64: 2, 32, 64>}, {pipeline_mode = #tpu.pipeline_mode<synchronous>, transform_indices = @transform_4, window_bounds = array<i64: 2, 64, 32>}, {pipeline_mode = #tpu.pipeline_mode<synchronous>, transform_indices = @transform_5, window_bounds = array<i64: 2, 8, 64>}, {transform_indices = @transform_6, window_bounds = array<i64: 1, 8, 32>}, {transform_indices = @transform_7, window_bounds = array<i64: 2, 1, 32, 8>}]} {
    %0 = arith.index_cast %arg0 : i32 to index
    %1 = memref.load %arg1[%0] : memref<2xi32, #tpu.memory_space<smem>>
    %2 = tpu.iota {dimensions = array<i32: 1>} : vector<32x8xi32>
    %3 = vector.broadcast %1 : i32 to vector<32x8xi32>
    %4 = arith.cmpi slt, %2, %3 : vector<32x8xi32>
    %c0 = arith.constant 0 : index
    %c0_0 = arith.constant 0 : index
    %c0_1 = arith.constant 0 : index
    %5 = vector.load %arg2[%c0, %c0_0, %c0_1] : memref<1x8x32xf32, #tpu.memory_space<vmem>>, vector<1x8x32xf32>
    %6 = vector.shape_cast %5 : vector<1x8x32xf32> to vector<8x32xf32>
    %c0_2 = arith.constant 0 : index
    %c0_3 = arith.constant 0 : index
    %c0_4 = arith.constant 0 : index
    %7 = vector.load %arg3[%c0_2, %c0_3, %c0_4] : memref<2x32x96xbf16, #tpu.memory_space<vmem>>, vector<1x32x96xbf16>
    %8 = vector.shape_cast %7 : vector<1x32x96xbf16> to vector<32x96xbf16>
    %c0_5 = arith.constant 0 : index
    %c0_6 = arith.constant 0 : index
    %c0_7 = arith.constant 0 : index
    %9 = vector.load %arg4[%c0_5, %c0_6, %c0_7] : memref<2x32x32xbf16, #tpu.memory_space<vmem>>, vector<1x32x32xbf16>
    %10 = vector.shape_cast %9 : vector<1x32x32xbf16> to vector<32x32xbf16>
    %c0_8 = arith.constant 0 : index
    %c0_9 = arith.constant 0 : index
    %c0_10 = arith.constant 0 : index
    %11 = vector.load %arg5[%c0_8, %c0_9, %c0_10] : memref<2x32x64xbf16, #tpu.memory_space<vmem>>, vector<1x32x64xbf16>
    %12 = vector.shape_cast %11 : vector<1x32x64xbf16> to vector<32x64xbf16>
    %c0_11 = arith.constant 0 : index
    %c0_12 = arith.constant 0 : index
    %c0_13 = arith.constant 0 : index
    %13 = vector.load %arg6[%c0_11, %c0_12, %c0_13] : memref<2x64x32xbf16, #tpu.memory_space<vmem>>, vector<1x64x32xbf16>
    %14 = vector.shape_cast %13 : vector<1x64x32xbf16> to vector<64x32xbf16>
    %c0_14 = arith.constant 0 : index
    %c0_15 = arith.constant 0 : index
    %c0_16 = arith.constant 0 : index
    %15 = vector.load %arg7[%c0_14, %c0_15, %c0_16] : memref<2x8x64xf32, #tpu.memory_space<vmem>>, vector<1x8x64xf32>
    %16 = vector.shape_cast %15 : vector<1x8x64xf32> to vector<8x64xf32>
    %17 = vector.extract_strided_slice %16 {offsets = [0, 0], sizes = [1, 32], strides = [1, 1]} : vector<8x64xf32> to vector<1x32xf32>
    %18 = vector.extract_strided_slice %16 {offsets = [1, 0], sizes = [1, 32], strides = [1, 1]} : vector<8x64xf32> to vector<1x32xf32>
    %19 = vector.extract_strided_slice %16 {offsets = [2, 0], sizes = [1, 64], strides = [1, 1]} : vector<8x64xf32> to vector<1x64xf32>
    %20 = vector.extract_strided_slice %16 {offsets = [3, 0], sizes = [1, 32], strides = [1, 1]} : vector<8x64xf32> to vector<1x32xf32>
    %21 = vector.extract_strided_slice %16 {offsets = [4, 0], sizes = [1, 32], strides = [1, 1]} : vector<8x64xf32> to vector<1x32xf32>
    %22 = vector.extract_strided_slice %16 {offsets = [5, 0], sizes = [1, 32], strides = [1, 1]} : vector<8x64xf32> to vector<1x32xf32>
    %23 = arith.truncf %6 : vector<8x32xf32> to vector<8x32xbf16>
    %cst = arith.constant dense<0.000000e+00> : vector<8x96xf32>
    %24 = tpu.matmul %23, %8, %cst {dimension_numbers = #tpu.dot_dimension_numbers<[1], [0], [0], [1], [0, 0, 1, 1], [], []>} : vector<8x32xbf16>, vector<32x96xbf16>, vector<8x96xf32> -> vector<8x96xf32>
    %25 = arith.truncf %24 : vector<8x96xf32> to vector<8x96xbf16>
    %26 = vector.extract_strided_slice %25 {offsets = [0, 0], sizes = [8, 8], strides = [1, 1]} : vector<8x96xbf16> to vector<8x8xbf16>
    %27 = vector.extract_strided_slice %25 {offsets = [0, 32], sizes = [8, 8], strides = [1, 1]} : vector<8x96xbf16> to vector<8x8xbf16>
    %cst_17 = arith.constant dense<0.000000e+00> : vector<8x8xf32>
    %28 = tpu.matmul %26, %27, %cst_17 {dimension_numbers = #tpu.dot_dimension_numbers<[1], [1], [0], [0], [0, 0, 1, 0], [], []>} : vector<8x8xbf16>, vector<8x8xbf16>, vector<8x8xf32> -> vector<8x8xf32>
    %c0_18 = arith.constant 0 : index
    %c0_19 = arith.constant 0 : index
    %29 = vector.load %arg10[%c0_18, %c0_19] : memref<32x8xf32, #tpu.memory_space<vmem>>, vector<8x8xf32>
    tpu.vector_store %arg10[%c0_18, %c0_19], %28 {strides = array<i32>} : memref<32x8xf32, #tpu.memory_space<vmem>>, vector<8x8xf32>,
    %30 = vector.extract_strided_slice %25 {offsets = [0, 8], sizes = [8, 8], strides = [1, 1]} : vector<8x96xbf16> to vector<8x8xbf16>
    %31 = vector.extract_strided_slice %25 {offsets = [0, 40], sizes = [8, 8], strides = [1, 1]} : vector<8x96xbf16> to vector<8x8xbf16>
    %cst_20 = arith.constant dense<0.000000e+00> : vector<8x8xf32>
    %32 = tpu.matmul %30, %31, %cst_20 {dimension_numbers = #tpu.dot_dimension_numbers<[1], [1], [0], [0], [0, 0, 1, 0], [], []>} : vector<8x8xbf16>, vector<8x8xbf16>, vector<8x8xf32> -> vector<8x8xf32>
    %c8 = arith.constant 8 : index
    %c0_21 = arith.constant 0 : index
    %33 = vector.load %arg10[%c8, %c0_21] : memref<32x8xf32, #tpu.memory_space<vmem>>, vector<8x8xf32>
    tpu.vector_store %arg10[%c8, %c0_21], %32 {strides = array<i32>} : memref<32x8xf32, #tpu.memory_space<vmem>>, vector<8x8xf32>,
    %34 = vector.extract_strided_slice %25 {offsets = [0, 16], sizes = [8, 8], strides = [1, 1]} : vector<8x96xbf16> to vector<8x8xbf16>
    %35 = vector.extract_strided_slice %25 {offsets = [0, 48], sizes = [8, 8], strides = [1, 1]} : vector<8x96xbf16> to vector<8x8xbf16>
    %cst_22 = arith.constant dense<0.000000e+00> : vector<8x8xf32>
    %36 = tpu.matmul %34, %35, %cst_22 {dimension_numbers = #tpu.dot_dimension_numbers<[1], [1], [0], [0], [0, 0, 1, 0], [], []>} : vector<8x8xbf16>, vector<8x8xbf16>, vector<8x8xf32> -> vector<8x8xf32>
    %c16 = arith.constant 16 : index
    %c0_23 = arith.constant 0 : index
    %37 = vector.load %arg10[%c16, %c0_23] : memref<32x8xf32, #tpu.memory_space<vmem>>, vector<8x8xf32>
    tpu.vector_store %arg10[%c16, %c0_23], %36 {strides = array<i32>} : memref<32x8xf32, #tpu.memory_space<vmem>>, vector<8x8xf32>,
    %38 = vector.extract_strided_slice %25 {offsets = [0, 24], sizes = [8, 8], strides = [1, 1]} : vector<8x96xbf16> to vector<8x8xbf16>
    %39 = vector.extract_strided_slice %25 {offsets = [0, 56], sizes = [8, 8], strides = [1, 1]} : vector<8x96xbf16> to vector<8x8xbf16>
    %cst_24 = arith.constant dense<0.000000e+00> : vector<8x8xf32>
    %40 = tpu.matmul %38, %39, %cst_24 {dimension_numbers = #tpu.dot_dimension_numbers<[1], [1], [0], [0], [0, 0, 1, 0], [], []>} : vector<8x8xbf16>, vector<8x8xbf16>, vector<8x8xf32> -> vector<8x8xf32>
    %c24 = arith.constant 24 : index
    %c0_25 = arith.constant 0 : index
    %41 = vector.load %arg10[%c24, %c0_25] : memref<32x8xf32, #tpu.memory_space<vmem>>, vector<8x8xf32>
    tpu.vector_store %arg10[%c24, %c0_25], %40 {strides = array<i32>} : memref<32x8xf32, #tpu.memory_space<vmem>>, vector<8x8xf32>,
    %c0_26 = arith.constant 0 : index
    %c0_27 = arith.constant 0 : index
    %42 = vector.load %arg10[%c0_26, %c0_27] : memref<32x8xf32, #tpu.memory_space<vmem>>, vector<32x8xf32>
    %cst_28 = arith.constant -1.000000e+06 : f32
    %43 = vector.broadcast %cst_28 : f32 to vector<32x8xf32>
    %44 = arith.select %4, %42, %43 : vector<32x8xi1>, vector<32x8xf32>
    %cst_29 = arith.constant dense<0xFF800000> : vector<32xf32>
    %45 = vector.multi_reduction <maximumf>, %44, %cst_29 [1] : vector<32x8xf32> to vector<32xf32>
    %46 = vector.shape_cast %45 : vector<32xf32> to vector<32x1xf32>
    %47 = vector.broadcast %46 : vector<32x1xf32> to vector<32x8xf32>
    %48 = arith.subf %44, %47 : vector<32x8xf32>
    %49 = math.exp %48 : vector<32x8xf32>
    %cst_30 = arith.constant dense<0.000000e+00> : vector<32xf32>
    %50 = vector.multi_reduction <add>, %49, %cst_30 [1] : vector<32x8xf32> to vector<32xf32>
    %51 = vector.shape_cast %50 : vector<32xf32> to vector<32x1xf32>
    %52 = tpu.reciprocal %51 {approx = true} : vector<32x1xf32> -> vector<32x1xf32>
    %53 = vector.broadcast %52 : vector<32x1xf32> to vector<32x8xf32>
    %54 = arith.mulf %49, %53 : vector<32x8xf32>
    %c0_31 = arith.constant 0 : index
    %c0_32 = arith.constant 0 : index
    %c0_33 = arith.constant 0 : index
    %c0_34 = arith.constant 0 : index
    %55 = vector.load %arg9[%c0_31, %c0_32, %c0_33, %c0_34] : memref<2x1x32x8xf32, #tpu.memory_space<vmem>>, vector<1x1x32x8xf32>
    %56 = vector.shape_cast %55 : vector<1x1x32x8xf32> to vector<32x8xf32>
    %57 = vector.shape_cast %54 : vector<32x8xf32> to vector<1x1x32x8xf32>
    tpu.vector_store %arg9[%c0_31, %c0_32, %c0_33, %c0_34], %57 {strides = array<i32>} : memref<2x1x32x8xf32, #tpu.memory_space<vmem>>, vector<1x1x32x8xf32>,
    %58 = arith.truncf %54 : vector<32x8xf32> to vector<32x8xbf16>
    %cst_35 = arith.constant 0.000000e+00 : f32
    %59 = vector.broadcast %cst_35 : f32 to vector<8x32xf32>
    %60 = vector.extract_strided_slice %25 {offsets = [0, 64], sizes = [8, 8], strides = [1, 1]} : vector<8x96xbf16> to vector<8x8xbf16>
    %61 = vector.extract_strided_slice %58 {offsets = [0, 0], sizes = [8, 8], strides = [1, 1]} : vector<32x8xbf16> to vector<8x8xbf16>
    %cst_36 = arith.constant dense<0.000000e+00> : vector<8x8xf32>
    %62 = tpu.matmul %61, %60, %cst_36 {dimension_numbers = #tpu.dot_dimension_numbers<[1], [0], [0], [1], [0, 0, 1, 1], [], []>} : vector<8x8xbf16>, vector<8x8xbf16>, vector<8x8xf32> -> vector<8x8xf32>
    %63 = arith.truncf %62 : vector<8x8xf32> to vector<8x8xbf16>
    %64 = vector.extract_strided_slice %10 {offsets = [0, 0], sizes = [8, 32], strides = [1, 1]} : vector<32x32xbf16> to vector<8x32xbf16>
    %cst_37 = arith.constant dense<0.000000e+00> : vector<8x32xf32>
    %65 = tpu.matmul %63, %64, %cst_37 {dimension_numbers = #tpu.dot_dimension_numbers<[1], [0], [0], [1], [0, 0, 1, 1], [], []>} : vector<8x8xbf16>, vector<8x32xbf16>, vector<8x32xf32> -> vector<8x32xf32>
    %66 = arith.addf %59, %65 : vector<8x32xf32>
    %67 = vector.extract_strided_slice %25 {offsets = [0, 72], sizes = [8, 8], strides = [1, 1]} : vector<8x96xbf16> to vector<8x8xbf16>
    %68 = vector.extract_strided_slice %58 {offsets = [8, 0], sizes = [8, 8], strides = [1, 1]} : vector<32x8xbf16> to vector<8x8xbf16>
    %cst_38 = arith.constant dense<0.000000e+00> : vector<8x8xf32>
    %69 = tpu.matmul %68, %67, %cst_38 {dimension_numbers = #tpu.dot_dimension_numbers<[1], [0], [0], [1], [0, 0, 1, 1], [], []>} : vector<8x8xbf16>, vector<8x8xbf16>, vector<8x8xf32> -> vector<8x8xf32>
    %70 = arith.truncf %69 : vector<8x8xf32> to vector<8x8xbf16>
    %71 = vector.extract_strided_slice %10 {offsets = [8, 0], sizes = [8, 32], strides = [1, 1]} : vector<32x32xbf16> to vector<8x32xbf16>
    %cst_39 = arith.constant dense<0.000000e+00> : vector<8x32xf32>
    %72 = tpu.matmul %70, %71, %cst_39 {dimension_numbers = #tpu.dot_dimension_numbers<[1], [0], [0], [1], [0, 0, 1, 1], [], []>} : vector<8x8xbf16>, vector<8x32xbf16>, vector<8x32xf32> -> vector<8x32xf32>
    %73 = arith.addf %66, %72 : vector<8x32xf32>
    %74 = vector.extract_strided_slice %25 {offsets = [0, 80], sizes = [8, 8], strides = [1, 1]} : vector<8x96xbf16> to vector<8x8xbf16>
    %75 = vector.extract_strided_slice %58 {offsets = [16, 0], sizes = [8, 8], strides = [1, 1]} : vector<32x8xbf16> to vector<8x8xbf16>
    %cst_40 = arith.constant dense<0.000000e+00> : vector<8x8xf32>
    %76 = tpu.matmul %75, %74, %cst_40 {dimension_numbers = #tpu.dot_dimension_numbers<[1], [0], [0], [1], [0, 0, 1, 1], [], []>} : vector<8x8xbf16>, vector<8x8xbf16>, vector<8x8xf32> -> vector<8x8xf32>
    %77 = arith.truncf %76 : vector<8x8xf32> to vector<8x8xbf16>
    %78 = vector.extract_strided_slice %10 {offsets = [16, 0], sizes = [8, 32], strides = [1, 1]} : vector<32x32xbf16> to vector<8x32xbf16>
    %cst_41 = arith.constant dense<0.000000e+00> : vector<8x32xf32>
    %79 = tpu.matmul %77, %78, %cst_41 {dimension_numbers = #tpu.dot_dimension_numbers<[1], [0], [0], [1], [0, 0, 1, 1], [], []>} : vector<8x8xbf16>, vector<8x32xbf16>, vector<8x32xf32> -> vector<8x32xf32>
    %80 = arith.addf %73, %79 : vector<8x32xf32>
    %81 = vector.extract_strided_slice %25 {offsets = [0, 88], sizes = [8, 8], strides = [1, 1]} : vector<8x96xbf16> to vector<8x8xbf16>
    %82 = vector.extract_strided_slice %58 {offsets = [24, 0], sizes = [8, 8], strides = [1, 1]} : vector<32x8xbf16> to vector<8x8xbf16>
    %cst_42 = arith.constant dense<0.000000e+00> : vector<8x8xf32>
    %83 = tpu.matmul %82, %81, %cst_42 {dimension_numbers = #tpu.dot_dimension_numbers<[1], [0], [0], [1], [0, 0, 1, 1], [], []>} : vector<8x8xbf16>, vector<8x8xbf16>, vector<8x8xf32> -> vector<8x8xf32>
    %84 = arith.truncf %83 : vector<8x8xf32> to vector<8x8xbf16>
    %85 = vector.extract_strided_slice %10 {offsets = [24, 0], sizes = [8, 32], strides = [1, 1]} : vector<32x32xbf16> to vector<8x32xbf16>
    %cst_43 = arith.constant dense<0.000000e+00> : vector<8x32xf32>
    %86 = tpu.matmul %84, %85, %cst_43 {dimension_numbers = #tpu.dot_dimension_numbers<[1], [0], [0], [1], [0, 0, 1, 1], [], []>} : vector<8x8xbf16>, vector<8x32xbf16>, vector<8x32xf32> -> vector<8x32xf32>
    %87 = arith.addf %80, %86 : vector<8x32xf32>
    %88 = arith.addf %87, %6 : vector<8x32xf32>
    %cst_44 = arith.constant dense<0.000000e+00> : vector<8xf32>
    %89 = vector.multi_reduction <add>, %88, %cst_44 [1] : vector<8x32xf32> to vector<8xf32>
    %90 = vector.shape_cast %89 : vector<8xf32> to vector<8x1xf32>
    %cst_45 = arith.constant 3.200000e+01 : f32
    %91 = vector.broadcast %cst_45 : f32 to vector<8x1xf32>
    %92 = arith.divf %90, %91 : vector<8x1xf32>
    %93 = vector.broadcast %92 : vector<8x1xf32> to vector<8x32xf32>
    %94 = arith.subf %88, %93 : vector<8x32xf32>
    %95 = arith.mulf %94, %94 : vector<8x32xf32>
    %cst_46 = arith.constant dense<0.000000e+00> : vector<8xf32>
    %96 = vector.multi_reduction <add>, %95, %cst_46 [1] : vector<8x32xf32> to vector<8xf32>
    %97 = vector.shape_cast %96 : vector<8xf32> to vector<8x1xf32>
    %cst_47 = arith.constant 3.200000e+01 : f32
    %98 = vector.broadcast %cst_47 : f32 to vector<8x1xf32>
    %99 = arith.divf %97, %98 : vector<8x1xf32>
    %100 = vector.broadcast %92 : vector<8x1xf32> to vector<8x32xf32>
    %101 = arith.subf %88, %100 : vector<8x32xf32>
    %cst_48 = arith.constant 9.99999974E-6 : f32
    %102 = vector.broadcast %cst_48 : f32 to vector<8x1xf32>
    %103 = arith.addf %99, %102 : vector<8x1xf32>
    %104 = math.rsqrt %103 : vector<8x1xf32>
    %105 = vector.broadcast %104 : vector<8x1xf32> to vector<8x32xf32>
    %106 = arith.mulf %101, %105 : vector<8x32xf32>
    %107 = vector.broadcast %17 : vector<1x32xf32> to vector<8x32xf32>
    %108 = arith.mulf %106, %107 : vector<8x32xf32>
    %109 = vector.broadcast %18 : vector<1x32xf32> to vector<8x32xf32>
    %110 = arith.addf %108, %109 : vector<8x32xf32>
    %111 = arith.truncf %110 : vector<8x32xf32> to vector<8x32xbf16>
    %cst_49 = arith.constant dense<0.000000e+00> : vector<8x64xf32>
    %112 = tpu.matmul %111, %12, %cst_49 {dimension_numbers = #tpu.dot_dimension_numbers<[1], [0], [0], [1], [0, 0, 1, 1], [], []>} : vector<8x32xbf16>, vector<32x64xbf16>, vector<8x64xf32> -> vector<8x64xf32>
    %113 = vector.broadcast %19 : vector<1x64xf32> to vector<8x64xf32>
    %114 = arith.addf %112, %113 : vector<8x64xf32>
    %cst_50 = arith.constant 0.000000e+00 : f32
    %115 = vector.broadcast %cst_50 : f32 to vector<8x64xf32>
    %116 = arith.maximumf %114, %115 : vector<8x64xf32>
    %117 = arith.truncf %116 : vector<8x64xf32> to vector<8x64xbf16>
    %cst_51 = arith.constant dense<0.000000e+00> : vector<8x32xf32>
    %118 = tpu.matmul %117, %14, %cst_51 {dimension_numbers = #tpu.dot_dimension_numbers<[1], [0], [0], [1], [0, 0, 1, 1], [], []>} : vector<8x64xbf16>, vector<64x32xbf16>, vector<8x32xf32> -> vector<8x32xf32>
    %119 = vector.broadcast %20 : vector<1x32xf32> to vector<8x32xf32>
    %120 = arith.addf %118, %119 : vector<8x32xf32>
    %121 = arith.addf %120, %110 : vector<8x32xf32>
    %cst_52 = arith.constant dense<0.000000e+00> : vector<8xf32>
    %122 = vector.multi_reduction <add>, %121, %cst_52 [1] : vector<8x32xf32> to vector<8xf32>
    %123 = vector.shape_cast %122 : vector<8xf32> to vector<8x1xf32>
    %cst_53 = arith.constant 3.200000e+01 : f32
    %124 = vector.broadcast %cst_53 : f32 to vector<8x1xf32>
    %125 = arith.divf %123, %124 : vector<8x1xf32>
    %126 = vector.broadcast %125 : vector<8x1xf32> to vector<8x32xf32>
    %127 = arith.subf %121, %126 : vector<8x32xf32>
    %128 = arith.mulf %127, %127 : vector<8x32xf32>
    %cst_54 = arith.constant dense<0.000000e+00> : vector<8xf32>
    %129 = vector.multi_reduction <add>, %128, %cst_54 [1] : vector<8x32xf32> to vector<8xf32>
    %130 = vector.shape_cast %129 : vector<8xf32> to vector<8x1xf32>
    %cst_55 = arith.constant 3.200000e+01 : f32
    %131 = vector.broadcast %cst_55 : f32 to vector<8x1xf32>
    %132 = arith.divf %130, %131 : vector<8x1xf32>
    %133 = vector.broadcast %125 : vector<8x1xf32> to vector<8x32xf32>
    %134 = arith.subf %121, %133 : vector<8x32xf32>
    %cst_56 = arith.constant 9.99999974E-6 : f32
    %135 = vector.broadcast %cst_56 : f32 to vector<8x1xf32>
    %136 = arith.addf %132, %135 : vector<8x1xf32>
    %137 = math.rsqrt %136 : vector<8x1xf32>
    %138 = vector.broadcast %137 : vector<8x1xf32> to vector<8x32xf32>
    %139 = arith.mulf %134, %138 : vector<8x32xf32>
    %140 = vector.broadcast %21 : vector<1x32xf32> to vector<8x32xf32>
    %141 = arith.mulf %139, %140 : vector<8x32xf32>
    %142 = vector.broadcast %22 : vector<1x32xf32> to vector<8x32xf32>
    %143 = arith.addf %141, %142 : vector<8x32xf32>
    %c1 = arith.constant 1 : index
    %c0_57 = arith.constant 0 : index
    %c0_58 = arith.constant 0 : index
    %144 = vector.load %arg3[%c1, %c0_57, %c0_58] : memref<2x32x96xbf16, #tpu.memory_space<vmem>>, vector<1x32x96xbf16>
    %145 = vector.shape_cast %144 : vector<1x32x96xbf16> to vector<32x96xbf16>
    %c1_59 = arith.constant 1 : index
    %c0_60 = arith.constant 0 : index
    %c0_61 = arith.constant 0 : index
    %146 = vector.load %arg4[%c1_59, %c0_60, %c0_61] : memref<2x32x32xbf16, #tpu.memory_space<vmem>>, vector<1x32x32xbf16>
    %147 = vector.shape_cast %146 : vector<1x32x32xbf16> to vector<32x32xbf16>
    %c1_62 = arith.constant 1 : index
    %c0_63 = arith.constant 0 : index
    %c0_64 = arith.constant 0 : index
    %148 = vector.load %arg5[%c1_62, %c0_63, %c0_64] : memref<2x32x64xbf16, #tpu.memory_space<vmem>>, vector<1x32x64xbf16>
    %149 = vector.shape_cast %148 : vector<1x32x64xbf16> to vector<32x64xbf16>
    %c1_65 = arith.constant 1 : index
    %c0_66 = arith.constant 0 : index
    %c0_67 = arith.constant 0 : index
    %150 = vector.load %arg6[%c1_65, %c0_66, %c0_67] : memref<2x64x32xbf16, #tpu.memory_space<vmem>>, vector<1x64x32xbf16>
    %151 = vector.shape_cast %150 : vector<1x64x32xbf16> to vector<64x32xbf16>
    %c1_68 = arith.constant 1 : index
    %c0_69 = arith.constant 0 : index
    %c0_70 = arith.constant 0 : index
    %152 = vector.load %arg7[%c1_68, %c0_69, %c0_70] : memref<2x8x64xf32, #tpu.memory_space<vmem>>, vector<1x8x64xf32>
    %153 = vector.shape_cast %152 : vector<1x8x64xf32> to vector<8x64xf32>
    %154 = vector.extract_strided_slice %153 {offsets = [0, 0], sizes = [1, 32], strides = [1, 1]} : vector<8x64xf32> to vector<1x32xf32>
    %155 = vector.extract_strided_slice %153 {offsets = [1, 0], sizes = [1, 32], strides = [1, 1]} : vector<8x64xf32> to vector<1x32xf32>
    %156 = vector.extract_strided_slice %153 {offsets = [2, 0], sizes = [1, 64], strides = [1, 1]} : vector<8x64xf32> to vector<1x64xf32>
    %157 = vector.extract_strided_slice %153 {offsets = [3, 0], sizes = [1, 32], strides = [1, 1]} : vector<8x64xf32> to vector<1x32xf32>
    %158 = vector.extract_strided_slice %153 {offsets = [4, 0], sizes = [1, 32], strides = [1, 1]} : vector<8x64xf32> to vector<1x32xf32>
    %159 = vector.extract_strided_slice %153 {offsets = [5, 0], sizes = [1, 32], strides = [1, 1]} : vector<8x64xf32> to vector<1x32xf32>
    %160 = arith.truncf %143 : vector<8x32xf32> to vector<8x32xbf16>
    %cst_71 = arith.constant dense<0.000000e+00> : vector<8x96xf32>
    %161 = tpu.matmul %160, %145, %cst_71 {dimension_numbers = #tpu.dot_dimension_numbers<[1], [0], [0], [1], [0, 0, 1, 1], [], []>} : vector<8x32xbf16>, vector<32x96xbf16>, vector<8x96xf32> -> vector<8x96xf32>
    %162 = arith.truncf %161 : vector<8x96xf32> to vector<8x96xbf16>
    %163 = vector.extract_strided_slice %162 {offsets = [0, 0], sizes = [8, 8], strides = [1, 1]} : vector<8x96xbf16> to vector<8x8xbf16>
    %164 = vector.extract_strided_slice %162 {offsets = [0, 32], sizes = [8, 8], strides = [1, 1]} : vector<8x96xbf16> to vector<8x8xbf16>
    %cst_72 = arith.constant dense<0.000000e+00> : vector<8x8xf32>
    %165 = tpu.matmul %163, %164, %cst_72 {dimension_numbers = #tpu.dot_dimension_numbers<[1], [1], [0], [0], [0, 0, 1, 0], [], []>} : vector<8x8xbf16>, vector<8x8xbf16>, vector<8x8xf32> -> vector<8x8xf32>
    %c0_73 = arith.constant 0 : index
    %c0_74 = arith.constant 0 : index
    %166 = vector.load %arg10[%c0_73, %c0_74] : memref<32x8xf32, #tpu.memory_space<vmem>>, vector<8x8xf32>
    tpu.vector_store %arg10[%c0_73, %c0_74], %165 {strides = array<i32>} : memref<32x8xf32, #tpu.memory_space<vmem>>, vector<8x8xf32>,
    %167 = vector.extract_strided_slice %162 {offsets = [0, 8], sizes = [8, 8], strides = [1, 1]} : vector<8x96xbf16> to vector<8x8xbf16>
    %168 = vector.extract_strided_slice %162 {offsets = [0, 40], sizes = [8, 8], strides = [1, 1]} : vector<8x96xbf16> to vector<8x8xbf16>
    %cst_75 = arith.constant dense<0.000000e+00> : vector<8x8xf32>
    %169 = tpu.matmul %167, %168, %cst_75 {dimension_numbers = #tpu.dot_dimension_numbers<[1], [1], [0], [0], [0, 0, 1, 0], [], []>} : vector<8x8xbf16>, vector<8x8xbf16>, vector<8x8xf32> -> vector<8x8xf32>
    %c8_76 = arith.constant 8 : index
    %c0_77 = arith.constant 0 : index
    %170 = vector.load %arg10[%c8_76, %c0_77] : memref<32x8xf32, #tpu.memory_space<vmem>>, vector<8x8xf32>
    tpu.vector_store %arg10[%c8_76, %c0_77], %169 {strides = array<i32>} : memref<32x8xf32, #tpu.memory_space<vmem>>, vector<8x8xf32>,
    %171 = vector.extract_strided_slice %162 {offsets = [0, 16], sizes = [8, 8], strides = [1, 1]} : vector<8x96xbf16> to vector<8x8xbf16>
    %172 = vector.extract_strided_slice %162 {offsets = [0, 48], sizes = [8, 8], strides = [1, 1]} : vector<8x96xbf16> to vector<8x8xbf16>
    %cst_78 = arith.constant dense<0.000000e+00> : vector<8x8xf32>
    %173 = tpu.matmul %171, %172, %cst_78 {dimension_numbers = #tpu.dot_dimension_numbers<[1], [1], [0], [0], [0, 0, 1, 0], [], []>} : vector<8x8xbf16>, vector<8x8xbf16>, vector<8x8xf32> -> vector<8x8xf32>
    %c16_79 = arith.constant 16 : index
    %c0_80 = arith.constant 0 : index
    %174 = vector.load %arg10[%c16_79, %c0_80] : memref<32x8xf32, #tpu.memory_space<vmem>>, vector<8x8xf32>
    tpu.vector_store %arg10[%c16_79, %c0_80], %173 {strides = array<i32>} : memref<32x8xf32, #tpu.memory_space<vmem>>, vector<8x8xf32>,
    %175 = vector.extract_strided_slice %162 {offsets = [0, 24], sizes = [8, 8], strides = [1, 1]} : vector<8x96xbf16> to vector<8x8xbf16>
    %176 = vector.extract_strided_slice %162 {offsets = [0, 56], sizes = [8, 8], strides = [1, 1]} : vector<8x96xbf16> to vector<8x8xbf16>
    %cst_81 = arith.constant dense<0.000000e+00> : vector<8x8xf32>
    %177 = tpu.matmul %175, %176, %cst_81 {dimension_numbers = #tpu.dot_dimension_numbers<[1], [1], [0], [0], [0, 0, 1, 0], [], []>} : vector<8x8xbf16>, vector<8x8xbf16>, vector<8x8xf32> -> vector<8x8xf32>
    %c24_82 = arith.constant 24 : index
    %c0_83 = arith.constant 0 : index
    %178 = vector.load %arg10[%c24_82, %c0_83] : memref<32x8xf32, #tpu.memory_space<vmem>>, vector<8x8xf32>
    tpu.vector_store %arg10[%c24_82, %c0_83], %177 {strides = array<i32>} : memref<32x8xf32, #tpu.memory_space<vmem>>, vector<8x8xf32>,
    %c0_84 = arith.constant 0 : index
    %c0_85 = arith.constant 0 : index
    %179 = vector.load %arg10[%c0_84, %c0_85] : memref<32x8xf32, #tpu.memory_space<vmem>>, vector<32x8xf32>
    %cst_86 = arith.constant -1.000000e+06 : f32
    %180 = vector.broadcast %cst_86 : f32 to vector<32x8xf32>
    %181 = arith.select %4, %179, %180 : vector<32x8xi1>, vector<32x8xf32>
    %cst_87 = arith.constant dense<0xFF800000> : vector<32xf32>
    %182 = vector.multi_reduction <maximumf>, %181, %cst_87 [1] : vector<32x8xf32> to vector<32xf32>
    %183 = vector.shape_cast %182 : vector<32xf32> to vector<32x1xf32>
    %184 = vector.broadcast %183 : vector<32x1xf32> to vector<32x8xf32>
    %185 = arith.subf %181, %184 : vector<32x8xf32>
    %186 = math.exp %185 : vector<32x8xf32>
    %cst_88 = arith.constant dense<0.000000e+00> : vector<32xf32>
    %187 = vector.multi_reduction <add>, %186, %cst_88 [1] : vector<32x8xf32> to vector<32xf32>
    %188 = vector.shape_cast %187 : vector<32xf32> to vector<32x1xf32>
    %189 = tpu.reciprocal %188 {approx = true} : vector<32x1xf32> -> vector<32x1xf32>
    %190 = vector.broadcast %189 : vector<32x1xf32> to vector<32x8xf32>
    %191 = arith.mulf %186, %190 : vector<32x8xf32>
    %c1_89 = arith.constant 1 : index
    %c0_90 = arith.constant 0 : index
    %c0_91 = arith.constant 0 : index
    %c0_92 = arith.constant 0 : index
    %192 = vector.load %arg9[%c1_89, %c0_90, %c0_91, %c0_92] : memref<2x1x32x8xf32, #tpu.memory_space<vmem>>, vector<1x1x32x8xf32>
    %193 = vector.shape_cast %192 : vector<1x1x32x8xf32> to vector<32x8xf32>
    %194 = vector.shape_cast %191 : vector<32x8xf32> to vector<1x1x32x8xf32>
    tpu.vector_store %arg9[%c1_89, %c0_90, %c0_91, %c0_92], %194 {strides = array<i32>} : memref<2x1x32x8xf32, #tpu.memory_space<vmem>>, vector<1x1x32x8xf32>,
    %195 = arith.truncf %191 : vector<32x8xf32> to vector<32x8xbf16>
    %cst_93 = arith.constant 0.000000e+00 : f32
    %196 = vector.broadcast %cst_93 : f32 to vector<8x32xf32>
    %197 = vector.extract_strided_slice %162 {offsets = [0, 64], sizes = [8, 8], strides = [1, 1]} : vector<8x96xbf16> to vector<8x8xbf16>
    %198 = vector.extract_strided_slice %195 {offsets = [0, 0], sizes = [8, 8], strides = [1, 1]} : vector<32x8xbf16> to vector<8x8xbf16>
    %cst_94 = arith.constant dense<0.000000e+00> : vector<8x8xf32>
    %199 = tpu.matmul %198, %197, %cst_94 {dimension_numbers = #tpu.dot_dimension_numbers<[1], [0], [0], [1], [0, 0, 1, 1], [], []>} : vector<8x8xbf16>, vector<8x8xbf16>, vector<8x8xf32> -> vector<8x8xf32>
    %200 = arith.truncf %199 : vector<8x8xf32> to vector<8x8xbf16>
    %201 = vector.extract_strided_slice %147 {offsets = [0, 0], sizes = [8, 32], strides = [1, 1]} : vector<32x32xbf16> to vector<8x32xbf16>
    %cst_95 = arith.constant dense<0.000000e+00> : vector<8x32xf32>
    %202 = tpu.matmul %200, %201, %cst_95 {dimension_numbers = #tpu.dot_dimension_numbers<[1], [0], [0], [1], [0, 0, 1, 1], [], []>} : vector<8x8xbf16>, vector<8x32xbf16>, vector<8x32xf32> -> vector<8x32xf32>
    %203 = arith.addf %196, %202 : vector<8x32xf32>
    %204 = vector.extract_strided_slice %162 {offsets = [0, 72], sizes = [8, 8], strides = [1, 1]} : vector<8x96xbf16> to vector<8x8xbf16>
    %205 = vector.extract_strided_slice %195 {offsets = [8, 0], sizes = [8, 8], strides = [1, 1]} : vector<32x8xbf16> to vector<8x8xbf16>
    %cst_96 = arith.constant dense<0.000000e+00> : vector<8x8xf32>
    %206 = tpu.matmul %205, %204, %cst_96 {dimension_numbers = #tpu.dot_dimension_numbers<[1], [0], [0], [1], [0, 0, 1, 1], [], []>} : vector<8x8xbf16>, vector<8x8xbf16>, vector<8x8xf32> -> vector<8x8xf32>
    %207 = arith.truncf %206 : vector<8x8xf32> to vector<8x8xbf16>
    %208 = vector.extract_strided_slice %147 {offsets = [8, 0], sizes = [8, 32], strides = [1, 1]} : vector<32x32xbf16> to vector<8x32xbf16>
    %cst_97 = arith.constant dense<0.000000e+00> : vector<8x32xf32>
    %209 = tpu.matmul %207, %208, %cst_97 {dimension_numbers = #tpu.dot_dimension_numbers<[1], [0], [0], [1], [0, 0, 1, 1], [], []>} : vector<8x8xbf16>, vector<8x32xbf16>, vector<8x32xf32> -> vector<8x32xf32>
    %210 = arith.addf %203, %209 : vector<8x32xf32>
    %211 = vector.extract_strided_slice %162 {offsets = [0, 80], sizes = [8, 8], strides = [1, 1]} : vector<8x96xbf16> to vector<8x8xbf16>
    %212 = vector.extract_strided_slice %195 {offsets = [16, 0], sizes = [8, 8], strides = [1, 1]} : vector<32x8xbf16> to vector<8x8xbf16>
    %cst_98 = arith.constant dense<0.000000e+00> : vector<8x8xf32>
    %213 = tpu.matmul %212, %211, %cst_98 {dimension_numbers = #tpu.dot_dimension_numbers<[1], [0], [0], [1], [0, 0, 1, 1], [], []>} : vector<8x8xbf16>, vector<8x8xbf16>, vector<8x8xf32> -> vector<8x8xf32>
    %214 = arith.truncf %213 : vector<8x8xf32> to vector<8x8xbf16>
    %215 = vector.extract_strided_slice %147 {offsets = [16, 0], sizes = [8, 32], strides = [1, 1]} : vector<32x32xbf16> to vector<8x32xbf16>
    %cst_99 = arith.constant dense<0.000000e+00> : vector<8x32xf32>
    %216 = tpu.matmul %214, %215, %cst_99 {dimension_numbers = #tpu.dot_dimension_numbers<[1], [0], [0], [1], [0, 0, 1, 1], [], []>} : vector<8x8xbf16>, vector<8x32xbf16>, vector<8x32xf32> -> vector<8x32xf32>
    %217 = arith.addf %210, %216 : vector<8x32xf32>
    %218 = vector.extract_strided_slice %162 {offsets = [0, 88], sizes = [8, 8], strides = [1, 1]} : vector<8x96xbf16> to vector<8x8xbf16>
    %219 = vector.extract_strided_slice %195 {offsets = [24, 0], sizes = [8, 8], strides = [1, 1]} : vector<32x8xbf16> to vector<8x8xbf16>
    %cst_100 = arith.constant dense<0.000000e+00> : vector<8x8xf32>
    %220 = tpu.matmul %219, %218, %cst_100 {dimension_numbers = #tpu.dot_dimension_numbers<[1], [0], [0], [1], [0, 0, 1, 1], [], []>} : vector<8x8xbf16>, vector<8x8xbf16>, vector<8x8xf32> -> vector<8x8xf32>
    %221 = arith.truncf %220 : vector<8x8xf32> to vector<8x8xbf16>
    %222 = vector.extract_strided_slice %147 {offsets = [24, 0], sizes = [8, 32], strides = [1, 1]} : vector<32x32xbf16> to vector<8x32xbf16>
    %cst_101 = arith.constant dense<0.000000e+00> : vector<8x32xf32>
    %223 = tpu.matmul %221, %222, %cst_101 {dimension_numbers = #tpu.dot_dimension_numbers<[1], [0], [0], [1], [0, 0, 1, 1], [], []>} : vector<8x8xbf16>, vector<8x32xbf16>, vector<8x32xf32> -> vector<8x32xf32>
    %224 = arith.addf %217, %223 : vector<8x32xf32>
    %225 = arith.addf %224, %143 : vector<8x32xf32>
    %cst_102 = arith.constant dense<0.000000e+00> : vector<8xf32>
    %226 = vector.multi_reduction <add>, %225, %cst_102 [1] : vector<8x32xf32> to vector<8xf32>
    %227 = vector.shape_cast %226 : vector<8xf32> to vector<8x1xf32>
    %cst_103 = arith.constant 3.200000e+01 : f32
    %228 = vector.broadcast %cst_103 : f32 to vector<8x1xf32>
    %229 = arith.divf %227, %228 : vector<8x1xf32>
    %230 = vector.broadcast %229 : vector<8x1xf32> to vector<8x32xf32>
    %231 = arith.subf %225, %230 : vector<8x32xf32>
    %232 = arith.mulf %231, %231 : vector<8x32xf32>
    %cst_104 = arith.constant dense<0.000000e+00> : vector<8xf32>
    %233 = vector.multi_reduction <add>, %232, %cst_104 [1] : vector<8x32xf32> to vector<8xf32>
    %234 = vector.shape_cast %233 : vector<8xf32> to vector<8x1xf32>
    %cst_105 = arith.constant 3.200000e+01 : f32
    %235 = vector.broadcast %cst_105 : f32 to vector<8x1xf32>
    %236 = arith.divf %234, %235 : vector<8x1xf32>
    %237 = vector.broadcast %229 : vector<8x1xf32> to vector<8x32xf32>
    %238 = arith.subf %225, %237 : vector<8x32xf32>
    %cst_106 = arith.constant 9.99999974E-6 : f32
    %239 = vector.broadcast %cst_106 : f32 to vector<8x1xf32>
    %240 = arith.addf %236, %239 : vector<8x1xf32>
    %241 = math.rsqrt %240 : vector<8x1xf32>
    %242 = vector.broadcast %241 : vector<8x1xf32> to vector<8x32xf32>
    %243 = arith.mulf %238, %242 : vector<8x32xf32>
    %244 = vector.broadcast %154 : vector<1x32xf32> to vector<8x32xf32>
    %245 = arith.mulf %243, %244 : vector<8x32xf32>
    %246 = vector.broadcast %155 : vector<1x32xf32> to vector<8x32xf32>
    %247 = arith.addf %245, %246 : vector<8x32xf32>
    %248 = arith.truncf %247 : vector<8x32xf32> to vector<8x32xbf16>
    %cst_107 = arith.constant dense<0.000000e+00> : vector<8x64xf32>
    %249 = tpu.matmul %248, %149, %cst_107 {dimension_numbers = #tpu.dot_dimension_numbers<[1], [0], [0], [1], [0, 0, 1, 1], [], []>} : vector<8x32xbf16>, vector<32x64xbf16>, vector<8x64xf32> -> vector<8x64xf32>
    %250 = vector.broadcast %156 : vector<1x64xf32> to vector<8x64xf32>
    %251 = arith.addf %249, %250 : vector<8x64xf32>
    %cst_108 = arith.constant 0.000000e+00 : f32
    %252 = vector.broadcast %cst_108 : f32 to vector<8x64xf32>
    %253 = arith.maximumf %251, %252 : vector<8x64xf32>
    %254 = arith.truncf %253 : vector<8x64xf32> to vector<8x64xbf16>
    %cst_109 = arith.constant dense<0.000000e+00> : vector<8x32xf32>
    %255 = tpu.matmul %254, %151, %cst_109 {dimension_numbers = #tpu.dot_dimension_numbers<[1], [0], [0], [1], [0, 0, 1, 1], [], []>} : vector<8x64xbf16>, vector<64x32xbf16>, vector<8x32xf32> -> vector<8x32xf32>
    %256 = vector.broadcast %157 : vector<1x32xf32> to vector<8x32xf32>
    %257 = arith.addf %255, %256 : vector<8x32xf32>
    %258 = arith.addf %257, %247 : vector<8x32xf32>
    %cst_110 = arith.constant dense<0.000000e+00> : vector<8xf32>
    %259 = vector.multi_reduction <add>, %258, %cst_110 [1] : vector<8x32xf32> to vector<8xf32>
    %260 = vector.shape_cast %259 : vector<8xf32> to vector<8x1xf32>
    %cst_111 = arith.constant 3.200000e+01 : f32
    %261 = vector.broadcast %cst_111 : f32 to vector<8x1xf32>
    %262 = arith.divf %260, %261 : vector<8x1xf32>
    %263 = vector.broadcast %262 : vector<8x1xf32> to vector<8x32xf32>
    %264 = arith.subf %258, %263 : vector<8x32xf32>
    %265 = arith.mulf %264, %264 : vector<8x32xf32>
    %cst_112 = arith.constant dense<0.000000e+00> : vector<8xf32>
    %266 = vector.multi_reduction <add>, %265, %cst_112 [1] : vector<8x32xf32> to vector<8xf32>
    %267 = vector.shape_cast %266 : vector<8xf32> to vector<8x1xf32>
    %cst_113 = arith.constant 3.200000e+01 : f32
    %268 = vector.broadcast %cst_113 : f32 to vector<8x1xf32>
    %269 = arith.divf %267, %268 : vector<8x1xf32>
    %270 = vector.broadcast %262 : vector<8x1xf32> to vector<8x32xf32>
    %271 = arith.subf %258, %270 : vector<8x32xf32>
    %cst_114 = arith.constant 9.99999974E-6 : f32
    %272 = vector.broadcast %cst_114 : f32 to vector<8x1xf32>
    %273 = arith.addf %269, %272 : vector<8x1xf32>
    %274 = math.rsqrt %273 : vector<8x1xf32>
    %275 = vector.broadcast %274 : vector<8x1xf32> to vector<8x32xf32>
    %276 = arith.mulf %271, %275 : vector<8x32xf32>
    %277 = vector.broadcast %158 : vector<1x32xf32> to vector<8x32xf32>
    %278 = arith.mulf %276, %277 : vector<8x32xf32>
    %279 = vector.broadcast %159 : vector<1x32xf32> to vector<8x32xf32>
    %280 = arith.addf %278, %279 : vector<8x32xf32>
    %c0_115 = arith.constant 0 : index
    %c0_116 = arith.constant 0 : index
    %c0_117 = arith.constant 0 : index
    %281 = vector.load %arg8[%c0_115, %c0_116, %c0_117] : memref<1x8x32xf32, #tpu.memory_space<vmem>>, vector<1x8x32xf32>
    %282 = vector.shape_cast %281 : vector<1x8x32xf32> to vector<8x32xf32>
    %283 = vector.shape_cast %280 : vector<8x32xf32> to vector<1x8x32xf32>
    tpu.vector_store %arg8[%c0_115, %c0_116, %c0_117], %283 {strides = array<i32>} : memref<1x8x32xf32, #tpu.memory_space<vmem>>, vector<1x8x32xf32>,
    return
  }
  func.func @transform_0(%arg0: i32, %arg1: memref<2xi32, #tpu.memory_space<smem>>) -> (i32, i32, i32) {
    %c0_i32 = arith.constant 0 : i32
    %c0_i32_0 = arith.constant 0 : i32
    %c0_i32_1 = arith.constant 0 : i32
    return %arg0, %c0_i32, %c0_i32_0 : i32, i32, i32
  }
  func.func @transform_1(%arg0: i32, %arg1: memref<2xi32, #tpu.memory_space<smem>>) -> (i32, i32, i32) {
    %c0_i32 = arith.constant 0 : i32
    %c0_i32_0 = arith.constant 0 : i32
    %c0_i32_1 = arith.constant 0 : i32
    %c0_i32_2 = arith.constant 0 : i32
    return %c0_i32, %c0_i32_0, %c0_i32_1 : i32, i32, i32
  }
  func.func @transform_2(%arg0: i32, %arg1: memref<2xi32, #tpu.memory_space<smem>>) -> (i32, i32, i32) {
    %c0_i32 = arith.constant 0 : i32
    %c0_i32_0 = arith.constant 0 : i32
    %c0_i32_1 = arith.constant 0 : i32
    %c0_i32_2 = arith.constant 0 : i32
    return %c0_i32, %c0_i32_0, %c0_i32_1 : i32, i32, i32
  }
  func.func @transform_3(%arg0: i32, %arg1: memref<2xi32, #tpu.memory_space<smem>>) -> (i32, i32, i32) {
    %c0_i32 = arith.constant 0 : i32
    %c0_i32_0 = arith.constant 0 : i32
    %c0_i32_1 = arith.constant 0 : i32
    %c0_i32_2 = arith.constant 0 : i32
    return %c0_i32, %c0_i32_0, %c0_i32_1 : i32, i32, i32
  }
  func.func @transform_4(%arg0: i32, %arg1: memref<2xi32, #tpu.memory_space<smem>>) -> (i32, i32, i32) {
    %c0_i32 = arith.constant 0 : i32
    %c0_i32_0 = arith.constant 0 : i32
    %c0_i32_1 = arith.constant 0 : i32
    %c0_i32_2 = arith.constant 0 : i32
    return %c0_i32, %c0_i32_0, %c0_i32_1 : i32, i32, i32
  }
  func.func @transform_5(%arg0: i32, %arg1: memref<2xi32, #tpu.memory_space<smem>>) -> (i32, i32, i32) {
    %c0_i32 = arith.constant 0 : i32
    %c0_i32_0 = arith.constant 0 : i32
    %c0_i32_1 = arith.constant 0 : i32
    %c0_i32_2 = arith.constant 0 : i32
    return %c0_i32, %c0_i32_0, %c0_i32_1 : i32, i32, i32
  }
  func.func @transform_6(%arg0: i32, %arg1: memref<2xi32, #tpu.memory_space<smem>>) -> (i32, i32, i32) {
    %c0_i32 = arith.constant 0 : i32
    %c0_i32_0 = arith.constant 0 : i32
    %c0_i32_1 = arith.constant 0 : i32
    return %arg0, %c0_i32, %c0_i32_0 : i32, i32, i32
  }
  func.func @transform_7(%arg0: i32, %arg1: memref<2xi32, #tpu.memory_space<smem>>) -> (i32, i32, i32, i32) {
    %c0_i32 = arith.constant 0 : i32
    %c0_i32_0 = arith.constant 0 : i32
    %c0_i32_1 = arith.constant 0 : i32
    %c0_i32_2 = arith.constant 0 : i32
    return %c0_i32, %arg0, %c0_i32_0, %c0_i32_1 : i32, i32, i32, i32
  }
}

</mosaic_0001>

<bundles_post_ra>
// kernel: tpu_custom_call.1
= control target key start
LH: loop header
LB: loop body
LE: loop exit
PB: predicated region body
PF: predicated region fallthrough
CT: control target
= control target key end

     0   :  { %s3554_s0 = inlined_call_operand.hbm [shape: s32[2], index: 0, kind: input, shape index: {}]   ;;  %s3555_s1 = inlined_call_operand.hbm [shape: f32[2,8,32], index: 1, kind: input, shape index: {}]   ;;  %s3556_s2 = inlined_call_operand.vmem [shape: bf16[2,32,96], index: 2, kind: input, shape index: {}]   ;;  %s3557_s3 = inlined_call_operand.vmem [shape: bf16[2,32,32], index: 3, kind: input, shape index: {}]   ;;  %s3558_s4 = inlined_call_operand.vmem [shape: bf16[2,32,64], index: 4, kind: input, shape index: {}]   ;;  %s3559_s5 = inlined_call_operand.vmem [shape: bf16[2,64,32], index: 5, kind: input, shape index: {}]   ;;  %s3560_s6 = inlined_call_operand.vmem [shape: f32[2,8,64], index: 6, kind: input, shape index: {}]   ;;  %s3561_s7 = inlined_call_operand.hbm [shape: f32[2,8,32], index: 7, kind: output, shape index: {0}]   ;;  %s3562_s8 = inlined_call_operand.vmem [shape: f32[2,2,32,8], index: 8, kind: output, shape index: {1}]  }
   0x1   :  { %s2793_s29 = scalar_lea.hbm %s3554_s0, 16 }
   0x2   :  { %p2794_p0 = scmp.ne.s32.totalorder %s3554_s0, %s2793_s29  ;;  %p2797_p1 = scmp.lt.u32.totalorder %s2793_s29, %s3554_s0 }
   0x4   :  { %p2799_p2 = pnand %p2797_p1, %p2794_p0 }
   0x6   :  { %2802 = shalt.err (!%p2799_p2)  }
   0x7   :  { %s2903_s12 = smov [#allocation4]  }
   0x8   :  { %15 = dma.hbm_to_smem %s3554_s0, 16, %s2903_s12, [#allocation3] }
   0x9   :  { %2877 = dma.done.wait [#allocation3], 16 }
   0xa   :  { %2878 = vsyncadd [#allocation3], 4294967280 }
   0xb   :  { %17 = sfence }
   0xc   :  { %18 = vsyncpa [#allocation6], 0 }
   0xd   :  { %20 = vsyncpa [#allocation6 + $0x1], 0 }
   0xe   :  { %21 = vsyncpa [#allocation7], 0 }
   0xf   :  { %23 = vsyncpa [#allocation7 + $0x1], 0  ;;  %s2976_s15 = smov 0   ;;  %s2978_s16 = smov 0  }
  0x10   :  { %s2980_s17 = smov 0   ;;  %s2982_s18 = smov 0  }
  0x11 LB: > { %s2997_s0 = sadd.s32 4294967295, %s2901_s18   ;;  %s2319_s19 = sadd.s32 4294967294, %s2901_s18   ;;  %s2901_s18 = sphi %s2982_s18, %s3595_s18   ;;  %s2897_s17 = sphi %s2980_s17, %s3594_s17   ;;  %s2893_s16 = sphi %s2978_s16, %s3593_s16   ;;  %s2889_s15 = sphi %s2976_s15, %s3592_s15  }
  0x12   : > { %s3001_s20 = sadd.s32 1, %s2901_s18   ;;  %s36_s21 = sadd.s32 1, %s2897_s17 }
  0x13   : > { %s33_s22 = ssub.s32 %s2901_s18, %s3001_s20  ;;  %p43_p3 = scmp.ne.s32.totalorder %s2897_s17, %s2893_s16 }
  0x14   : > { %p34_p4 = scmp.eq.s32.totalorder %s33_s22, 0  ;;  %p44_p5 = scmp.eq.s32.totalorder %s2901_s18, 0 }
  0x15   : > { %p49_p6 = scmp.ne.s32.totalorder %s2893_s16, %s2889_s15  ;;  %p50_p7 = scmp.eq.s32.totalorder %s2997_s0, 0 }
  0x16   : > { %s3013_s23 = scalar_select %p34_p4, %s2897_s17, %s36_s21  }
  0x17   : > { %p3015_p8 = por %p44_p5, %p43_p3  ;;  %p3019_p9 = por %p50_p7, %p49_p6 }
  0x18   : > { %p178_p10 = scmp.eq.s32.totalorder %s2997_s0, 1  ;;  %p184_p11 = scmp.eq.s32.totalorder %s2319_s19, 1 }
  0x19   : > { %p2689_p13 = scmp.lt.s32.totalorder %s2901_s18, 2  ;;  %s245_s28 = sand.u32 1, %s2897_s17  }
  0x1a   : > { %p3026_p0 = por %p178_p10, %p43_p3  ;;  %p3030_p1 = por %p184_p11, %p49_p6 }
  0x1b   : > { %s2323_s29 = sshll.u32 %s2901_s18, 7  ;;  %s2322_s30 = sshll.u32 %s245_s28, 3 }
  0x1c   : > { %s3574_s26 = scalar_select %p3026_p0, 1, 0 }
  0x1d   : > { %s3575_s27 = scalar_select %p3030_p1, 1, 0 }
  0x1e   : > { %s3039_s11 = scalar_lea.hbm %s3555_s1, %s2323_s29  ;;  %s249_s12 = scalar_lea.vmem [#allocation5], %s2322_s30 }
  0x1f   : > { %s256_s13 = sshll.u32 %s249_s12, 4  ;;  %p3043_p2 = pnand %p2689_p13, %p3015_p8  ;;  %s3047_s13 = int_to_ptr.vmem [resolvable:$true] %s256_s13 }
  0x20   : > { %s246_s19 = scalar_lea.sflag [#allocation6], %s245_s28  ;;  %s2803_s21 = scalar_lea.hbm %s3039_s11, 128 }
  0x21   : > { %p2804_p5 = scmp.ne.s32.totalorder %s3039_s11, %s2803_s21  ;;  %p2805_p6 = pneg %p3043_p2 }
  0x22   : > { %s2808_s29 = scalar_lea.hbm %s3555_s1, 256  ;;  %p2809_p8 = scmp.lt.u32.totalorder %s3039_s11, %s3555_s1 }
  0x23   : > { %p2806_p7 = pnand %p2805_p6, %p2804_p5  ;;  %p2810_p11 = scmp.lt.u32.totalorder %s2808_s29, %s2803_s21 }
  0x24   : > { %p2812_p12 = scmp.lt.u32.totalorder %s2803_s21, %s3039_s11 }
  0x25   : > { %p2807_p10 = pneg %p2806_p7  ;;  %p2811_p13 = por %p2810_p11, %p2809_p8 }
  0x27   : > { %p2813_p3 = por %p2812_p12, %p2811_p13 }
  0x29   : > { %p2814_p4 = pnand %p2813_p3, %p2807_p10 }
  0x2b   : > { %2817 = shalt.err (!%p2814_p4)
}
  0x2c   : > { %s2818_s28 = scalar_lea.vmem %s3047_s13, 128  ;;  %s2904_s10 = smov [#allocation5]  }
  0x2d   : > { %p2819_p5 = scmp.ne.s32.totalorder %s3047_s13, %s2818_s28  ;;  %s2823_s12 = sshll.u32 %s2904_s10, 4  ;;  %s2824_s12 = int_to_ptr.vmem [resolvable:$false] %s2823_s12 }
  0x2e   : > { %s2825_s22 = scalar_lea.vmem %s2824_s12, 256  ;;  %p2826_p0 = scmp.lt.s32.totalorder %s3047_s13, %s2824_s12 }
  0x2f   : > { %p2821_p7 = pnand %p2819_p5, %p2805_p6  ;;  %p2827_p8 = scmp.lt.s32.totalorder %s2825_s22, %s2818_s28 }
  0x31   : > { %p2822_p1 = pneg %p2821_p7  ;;  %p2828_p11 = por %p2827_p8, %p2826_p0 }
  0x33   : > { %p2829_p12 = pnand %p2828_p11, %p2822_p1 }
  0x35   : > { %2832 = shalt.err (!%p2829_p12)
}
  0x36   : > { %2684 = dma.hbm_to_vmem [thread:$0]  (!%p3043_p2), %s3039_s11, 128, %s3047_s13, %s246_s19  }
  0x37   : > { %p3577_p3 = scmp.lt.s32.totalorder %s2901_s18, 3  ;;  %p3578_p4 = scmp.ge.s32.totalorder %s2901_s18, 1 }
  0x39   : > { %p262_p6 = pnand %p3578_p4, %p3577_p3 }
  0x3a   : > { %s3081_s21 = sand.u32 (!%p262_p6), 1, %s2893_s16  }
  0x3b   : > { %265 = sbr.rel (%p262_p6) target bundleno = 5305 (0x14b9), region = 44  ;;  %s3564_s24 = sshll.u32 (!%p262_p6), %s3081_s21, 3 }
  0x3c   : > { %s268_s29 = scalar_lea.sflag (!%p262_p6), [#allocation6], %s3081_s21  ;;  %s271_s14 = scalar_lea.vmem (!%p262_p6), [#allocation5], %s3564_s24 }
  0x42   : > { %2880 = dma.done.wait (%p3019_p9), %s268_s29, 128  }
  0x43   : > { %2882 = vsyncadd (%p3019_p9), %s268_s29, 4294967168  ;;  %v2905_v0 = vmov 0.0   ;;  %vm2906_vm0 = vmmov 0   ;;  %v2737_v1 = vld [vmem:[%s3556_s2] sm:$0xff]   ;;  %v2738_v2 = vld [vmem:[%s3556_s2 + $0x8] sm:$0xff]   ;;  %vm347_vm1 = vcmask 261120   ;;  %v308_v21 = vlaneseq }
  0x44   : > { %2477 = vmatprep.subr.bf16.mxu1 %v2905_v0  ;;  %2481 = vmatprep.mubr.msk.bf16.mxu1 %vm2906_vm0, %v2905_v0  ;;  %v3103_v3 = vld [vmem:[%s271_s14] sm:$0xff]  ;;  %s2907_s25 = smov 120   ;;  %s2908_s9 = smov 96   ;;  %vm395_vm2 = vcmask 64512   ;;  %vm659_vm4 = vcmask 1043456   ;;  %vm1156_vm5 = vcmask 523264  }
  0x45   : > { %2491 = vmatprep.subr.bf16.mxu0 %v2905_v0  ;;  %2493 = vmatprep.mubr.msk.bf16.mxu0 %vm2906_vm0, %v2905_v0  ;;  %v334_v4 = vpack.c.bf16 %v3103_v3, %v3103_v3  ;;  %s2909_s28 = smov 80   ;;  %s2910_s10 = smov 88   ;;  %v309_v25 = vand.u32 127, %v308_v21 }
  0x46   : > { %2478 = vmatpush3.bf16.msra.mxu1 %v2737_v1  ;;  %s3570_s12 = smov 112   ;;  %s3571_s22 = smov 72  }
  0x47   : > { %2479 = vmatprep.subr.bf16.mxu1 %v2905_v0  ;;  %s3569_s29 = smov 104   ;;  %s307_s14 = sld [smem:[#allocation4 + %s2997_s0]] }
  0x48   : > { %s3568_s11 = smov 56   ;;  %s3565_s13 = smov 48  }
  0x49   : > { %s3566_s19 = smov 40   ;;  %s2327_s30 = sshll.u32 %s3081_s21, 6 }
  0x4a   : > { %2480 = vmatpush3.bf16.msra.mxu1 %v2738_v2  ;;  %s3583_s24 = smov 104   ;;  %p3589_p0 = scmp.ne.s32.totalorder %s3574_s26, 0 }
  0x4b   : > { %2485 = vmatprep.subr.bf16.mxu1 %v2905_v0 }
  0x4d   : > { %2482 = vmatmul.mubr.msk.bf16.vlgmr.msra.gmra.mrb[0].mxu1 %vm347_vm1, %v334_v4  ;;  %v310_v27 = vstv %s307_s14  ;;  %s3182_s14 = scalar_lea.vmem [#allocation9], %s2327_s30  ;;  %s3567_s30 = smov 64  }
  0x4e   : > { %2487 = vmatprep.mubr.msk.bf16.mxu1 %vm2906_vm0, %v2905_v0  ;;  %vm3153_vm3 = vcmp.lt.s32.totalorder %v309_v25, %v310_v27 }
 0x120   : > { %v385_v5 = vpop.f32.mrb[0].mxu1 }
 0x121   : > { %v3112_v6 = vpack.c.bf16 %v385_v5, %v385_v5  ;;  %v2483_v7 = vpop.f32.mrb[1].mxu1 }
 0x122   : > { %v388_v8 = vpop.f32.mrb[2].mxu1 }
 0x123   : > { %443 = vrot.lane.b32.xlu1 %v3112_v6, %s2907_s25  ;;  %393 = vrot.lane.b32.xlu0 %v3112_v6, %s2908_s9  ;;  %v2484_v9 = vpop.f32.mrb[3].mxu1 }
 0x127   : > { %496 = vrot.lane.b32.xlu1 %v3112_v6, %s2909_s28  ;;  %445 = vrot.lane.b32.xlu0 %v3112_v6, %s2910_s10 }
 0x12b   : > { %494 = vrot.lane.b32.xlu1 %v3112_v6, %s3570_s12  ;;  %547 = vrot.lane.b32.xlu0 %v3112_v6, %s3571_s22  ;;  %s3581_s12 = smov 72   ;;  %s3582_s22 = smov 112  }
 0x12f   : > { %545 = vrot.lane.b32.xlu0 %v3112_v6, %s3569_s29 }
 0x195   : > { %v444_v10 = vpop.permute.xlu1 %443  ;;  %v394_v11 = vpop.permute.xlu0 %393 }
 0x196   : > { %v400_v12 = vsel %vm395_vm2, %v394_v11, 0 }
 0x197   : > { %2486 = vmatpush3.bf16.xpose.msra.mxu1 %v400_v12 }
 0x198   : > { %2497 = vmatprep.subr.bf16.mxu1 %v2905_v0 }
 0x199   : > { %v446_v13 = vpop.permute.xlu0 %445  ;;  %v497_v15 = vpop.permute.xlu1 %496 }
 0x19a   : > { %v451_v14 = vsel %vm395_vm2, %v446_v13, 0  ;;  %v502_v16 = vsel %vm395_vm2, %v497_v15, 0 }
 0x19b   : > { %2492 = vmatpush3.bf16.xpose.msra.mxu0 %v451_v14 }
 0x19c   : > { %2503 = vmatprep.subr.bf16.mxu0 %v2905_v0 }
 0x19d   : > { %v548_v17 = vpop.permute.xlu0 %547  ;;  %v495_v19 = vpop.permute.xlu1 %494 }
 0x19e   : > { %2488 = vmatmul.mubr.msk.bf16.vlgmr.msra.gmra.mrb[4].mxu1 %vm395_vm2, %v3112_v6  ;;  %v553_v18 = vsel %vm395_vm2, %v548_v17, 0 }
 0x19f   : > { %2498 = vmatpush3.bf16.xpose.msra.mxu1 %v502_v16  ;;  %2499 = vmatprep.mubr.msk.bf16.mxu1 %vm2906_vm0, %v2905_v0 }
 0x1a0   : > { %2509 = vmatprep.subr.bf16.mxu1 %v2905_v0 }
 0x1a1   : > { %v546_v20 = vpop.permute.xlu0 %545 }
 0x1a2   : > { %2494 = vmatmul.mubr.msk.bf16.vlgmr.msra.gmra.mrb[0].mxu0 %vm395_vm2, %v444_v10 }
 0x1a3   : > { %2504 = vmatpush3.bf16.xpose.msra.mxu0 %v553_v18  ;;  %2505 = vmatprep.mubr.msk.bf16.mxu0 %vm2906_vm0, %v2905_v0 }
 0x1a4   : > { %2515 = vmatprep.subr.bf16.mxu0 %v2905_v0 }
 0x1a6   : > { %2500 = vmatmul.mubr.msk.bf16.vlgmr.msra.gmra.mrb[8].mxu1 %vm395_vm2, %v495_v19 }
 0x1a7   : > { %2511 = vmatprep.mubr.msk.bf16.mxu1 %vm2906_vm0, %v2905_v0 }
 0x1aa   : > { %2506 = vmatmul.mubr.msk.bf16.vlgmr.msra.gmra.mrb[4].mxu0 %vm395_vm2, %v546_v20 }
 0x1ab   : > { %2517 = vmatprep.mubr.msk.bf16.mxu0 %vm2906_vm0, %v2905_v0 }
 0x271   : > { %v436_v22 = vpop.f32.mrb[4].mxu1 }
 0x272   : > { %442 = vst.msk [vmem:[#allocation2] sm:$0xff] %vm395_vm2, %v436_v22  ;;  %v2489_v23 = vpop.f32.mrb[5].mxu1 }
 0x273   : > { %v439_v24 = vpop.f32.mrb[6].mxu1 }
 0x274   : > { %v2490_v26 = vpop.f32.mrb[7].mxu1 }
 0x275   : > { %v487_v28 = vpop.f32.mrb[0].mxu0  ;;  %v318_v26 = vld [vmem:[%s3557_s3 + $0x4] sm:$0xf] }
 0x276   : > { %493 = vst.msk [vmem:[#allocation2 + $0x8] sm:$0xff] %vm395_vm2, %v487_v28  ;;  %v2495_v29 = vpop.f32.mrb[1].mxu0 }
 0x277   : > { %v490_v30 = vpop.f32.mrb[2].mxu0  ;;  %v759_v29 = vsel %vm659_vm4, %v318_v26, 0 }
 0x278   : > { %v2496_v32 = vpop.f32.mrb[3].mxu0 }
 0x279   : > { %v538_v33 = vpop.f32.mrb[8].mxu1  ;;  %v596_v34 = vld [vmem:[#allocation2] sm:$0xff] }
 0x27a   : > { %544 = vst.msk [vmem:[#allocation2 + $0x10] sm:$0xff] %vm395_vm2, %v538_v33  ;;  %v2501_v35 = vpop.f32.mrb[9].mxu1  ;;  %v600_v36 = vsel %vm3153_vm3, %v596_v34, -1000000.0 }
 0x27b   : > { %v541_v37 = vpop.f32.mrb[10].mxu1  ;;  %v604_v38 = vsel %vm395_vm2, %v600_v36, -inf }
 0x27c   : > { %v2502_v39 = vpop.f32.mrb[11].mxu1  ;;  %605 = vmax.xlane.f32.xlu1 %v604_v38 }
 0x27d   : > { %v589_v40 = vpop.f32.mrb[4].mxu0  ;;  %v597_v41 = vld [vmem:[#allocation2 + $0x8] sm:$0xff] }
 0x27e   : > { %595 = vst.msk [vmem:[#allocation2 + $0x18] sm:$0xff] %vm395_vm2, %v589_v40  ;;  %v2507_v42 = vpop.f32.mrb[5].mxu0  ;;  %v601_v43 = vsel %vm3153_vm3, %v597_v41, -1000000.0 }
 0x27f   : > { %v592_v44 = vpop.f32.mrb[6].mxu0  ;;  %v607_v45 = vsel %vm395_vm2, %v601_v43, -inf }
 0x280   : > { %v2508_v46 = vpop.f32.mrb[7].mxu0  ;;  %608 = vmax.xlane.f32.xlu0 %v607_v45  ;;  %v317_v44 = vld [vmem:[%s3557_s3] sm:$0xf] }
 0x281   : > { %v598_v55 = vld [vmem:[#allocation2 + $0x10] sm:$0xff]  ;;  %v805_v45 = vsel %vm659_vm4, %v317_v44, 0  ;;  %v319_v46 = vld [vmem:[%s3557_s3 + $0x8] sm:$0xf] }
 0x282   : > { %v602_v58 = vsel %vm3153_vm3, %v598_v55, -1000000.0 }
 0x283   : > { %v610_v60 = vsel %vm395_vm2, %v602_v58, -inf }
 0x285   : > { %v599_v59 = vld [vmem:[#allocation2 + $0x18] sm:$0xff] }
 0x286   : > { %v603_v61 = vsel %vm3153_vm3, %v599_v59, -1000000.0 }
 0x287   : > { %v613_v62 = vsel %vm395_vm2, %v603_v61, -inf }
 0x309   : > { %v606_v47 = vpop.xlane.xlu1 %605 }
 0x30a   : > { %v616_v48 = vsub.f32 %v600_v36, %v606_v47 }
 0x30c   : > { %v620_v49 = vmul.f32 1.442695, %v616_v48 }
 0x30d   : > { %v609_v50 = vpop.xlane.xlu0 %608 }
 0x30e   : > { %2753 = vpow2.f32 %v620_v49  ;;  %v617_v51 = vsub.f32 %v601_v43, %v609_v50  ;;  %v900_v50 = vsel %vm659_vm4, %v319_v46, 0 }
 0x310   : > { %v622_v52 = vmul.f32 1.442695, %v617_v51 }
 0x312   : > { %2755 = vpow2.f32 %v622_v52 }
 0x318   : > { %v2754_v53 = vpop.eup %2753 }
 0x319   : > { %v628_v54 = vsel %vm395_vm2, %v2754_v53, 0.0 }
 0x31a   : > { %629 = vadd.xlane.f32.xlu0 %v628_v54 }
 0x31c   : > { %v2756_v56 = vpop.eup %2755 }
 0x31d   : > { %v631_v57 = vsel %vm395_vm2, %v2756_v56, 0.0 }
 0x31e   : > { %632 = vadd.xlane.f32.xlu1 %v631_v57  ;;  %v320_v57 = vld [vmem:[%s3557_s3 + $0xc] sm:$0xf] }
 0x322   : > { %611 = vmax.xlane.f32.xlu1 %v610_v60 }
 0x326   : > { %614 = vmax.xlane.f32.xlu1 %v613_v62 }
 0x330   : > { %706 = vrot.lane.b32.xlu0 %v3112_v6, %s3568_s11 }
 0x334   : > { %847 = vrot.lane.b32.xlu0 %v3112_v6, %s3565_s13 }
 0x338   : > { %945 = vrot.lane.b32.xlu0 %v3112_v6, %s3566_s19 }
 0x3a7   : > { %v630_v63 = vpop.xlane.xlu0 %629 }
 0x3a8   : > { %2757 = vrcp.f32 %v630_v63 }
 0x3ab   : > { %v707_v1 = vpop.permute.xlu0 %706  ;;  %v633_v2 = vpop.xlane.xlu1 %632 }
 0x3ac   : > { %v712_v4 = vsel %vm659_vm4, %v707_v1, 0  ;;  %2759 = vrcp.f32 %v633_v2 }
 0x3ad   : > { %2516 = vmatpush3.bf16.msra.mxu0 %v712_v4 }
 0x3ae   : > { %2527 = vmatprep.subr.bf16.mxu0 %v2905_v0 }
 0x3af   : > { %v612_v5 = vpop.xlane.xlu1 %611  ;;  %v848_v33 = vpop.permute.xlu0 %847 }
 0x3b0   : > { %v618_v7 = vsub.f32 %v602_v58, %v612_v5  ;;  %v853_v38 = vsel %vm659_vm4, %v848_v33, 0  ;;  %v2742_v33 = vld [vmem:[%s3559_s5 + $0x8] sm:$0xff]  }
 0x3b2   : > { %v2758_v8 = vpop.eup %2757  ;;  %v624_v9 = vmul.f32 1.442695, %v618_v7 }
 0x3b3   : > { %v644_v10 = vmul.f32 %v2758_v8, %v2754_v53  ;;  %v615_v11 = vpop.xlane.xlu1 %614  ;;  %v946_v40 = vpop.permute.xlu0 %945 }
 0x3b4   : > { %2761 = vpow2.f32 %v624_v9  ;;  %v619_v12 = vsub.f32 %v603_v61, %v615_v11  ;;  %v951_v42 = vsel %vm659_vm4, %v946_v40, 0  ;;  %v998_v61 = vsel %vm659_vm4, %v320_v57, 0 }
 0x3b5   : > { %648 = vst.msk [vmem:[%s3182_s14] sm:$0xff] %vm395_vm2, %v644_v10 }
 0x3b6   : > { %v2760_v13 = vpop.eup %2759  ;;  %v626_v14 = vmul.f32 1.442695, %v619_v12 }
 0x3b7   : > { %v645_v15 = vmul.f32 %v2760_v13, %v2756_v56 }
 0x3b8   : > { %2763 = vpow2.f32 %v626_v14 }
 0x3b9   : > { %649 = vst.msk [vmem:[%s3182_s14 + $0x8] sm:$0xff] %vm395_vm2, %v645_v15  ;;  %v652_v16 = vpack.c.bf16 %v645_v15, %v644_v10 }
 0x3bb   : > { %v705_v17 = vrot.slane %v652_v16, 4 }
 0x3bd   : > { %2518 = vmatmul.mubr.msk.bf16.vlgmr.msra.gmra.mrb[8].mxu0 %vm395_vm2, %v705_v17 }
 0x3be   : > { %v2762_v18 = vpop.eup %2761  ;;  %2529 = vmatprep.mubr.msk.bf16.mxu0 %vm2906_vm0, %v2905_v0  ;;  %2528 = vmatpush3.bf16.msra.mxu0 %v805_v45 }
 0x3bf   : > { %v634_v19 = vsel %vm395_vm2, %v2762_v18, 0.0  ;;  %2539 = vmatprep.subr.bf16.mxu0 %v2905_v0 }
 0x3c0   : > { %635 = vadd.xlane.f32.xlu1 %v634_v19 }
 0x3c2   : > { %v2764_v20 = vpop.eup %2763 }
 0x3c3   : > { %v637_v22 = vsel %vm395_vm2, %v2764_v20, 0.0 }
 0x3c4   : > { %638 = vadd.xlane.f32.xlu1 %v637_v22 }
 0x3d5   : > { %654 = vrot.lane.b32.xlu1 %v3112_v6, %s3567_s30 }
 0x44d   : > { %v636_v23 = vpop.xlane.xlu1 %635 }
 0x44e   : > { %2765 = vrcp.f32 %v636_v23 }
 0x451   : > { %v639_v24 = vpop.xlane.xlu1 %638 }
 0x452   : > { %2767 = vrcp.f32 %v639_v24 }
 0x455   : > { %v655_v25 = vpop.permute.xlu1 %654 }
 0x456   : > { %v661_v27 = vsel %vm659_vm4, %v655_v25, 0 }
 0x457   : > { %2510 = vmatpush3.bf16.msra.mxu1 %v661_v27 }
 0x458   : > { %v2766_v28 = vpop.eup %2765  ;;  %2521 = vmatprep.subr.bf16.mxu1 %v2905_v0 }
 0x459   : > { %v646_v30 = vmul.f32 %v2766_v28, %v2762_v18 }
 0x45a   : > { %2512 = vmatmul.mubr.msk.bf16.vlgmr.msra.gmra.mrb[12].mxu1 %vm395_vm2, %v652_v16 }
 0x45b   : > { %650 = vst.msk [vmem:[%s3182_s14 + $0x10] sm:$0xff] %vm395_vm2, %v646_v30  ;;  %2522 = vmatpush3.bf16.msra.mxu1 %v759_v29  ;;  %2523 = vmatprep.mubr.msk.bf16.mxu1 %vm2906_vm0, %v2905_v0 }
 0x45c   : > { %v2768_v6 = vpop.eup %2767  ;;  %2533 = vmatprep.subr.bf16.mxu1 %v2905_v0 }
 0x45d   : > { %v647_v32 = vmul.f32 %v2768_v6, %v2764_v20  ;;  %v2739_v6 = vld [vmem:[%s3558_s4] sm:$0xff]  }
 0x45f   : > { %651 = vst.msk [vmem:[%s3182_s14 + $0x18] sm:$0xff] %vm395_vm2, %v647_v32  ;;  %v653_v41 = vpack.c.bf16 %v647_v32, %v646_v30  ;;  %v2740_v32 = vld [vmem:[%s3558_s4 + $0x8] sm:$0xff]  }
 0x461   : > { %v944_v43 = vrot.slane %v653_v41, 4 }
 0x490   : > { %v748_v34 = vpop.f32.mrb[8].mxu0 }
 0x491   : > { %v754_v35 = vpack.c.bf16 %v748_v34, %v748_v34  ;;  %v2519_v36 = vpop.f32.mrb[9].mxu0 }
 0x492   : > { %v751_v37 = vpop.f32.mrb[10].mxu0 }
 0x493   : > { %v2520_v39 = vpop.f32.mrb[11].mxu0  ;;  %2524 = vmatmul.mubr.msk.bf16.vlgmr.msra.gmra.mrb[16].mxu1 %vm395_vm2, %v754_v35  ;;  %v3266_v37 = vshrl.u32 %v308_v21, 7 }
 0x494   : > { %2534 = vmatpush3.bf16.msra.mxu1 %v853_v38  ;;  %2535 = vmatprep.mubr.msk.bf16.mxu1 %vm2906_vm0, %v2905_v0  ;;  %v333_v39 = vld [vmem:[%s3560_s6] sm:$0xff] }
 0x495   : > { %2545 = vmatprep.subr.bf16.mxu1 %v2905_v0  ;;  %v1058_v38 = vsub.s32 0, %v3266_v37  ;;  %v1063_v40 = vsub.s32 1, %v3266_v37 }
 0x497   : > { %v1064_v44 = vrot.slane %v333_v39, %v1063_v40 }
 0x49b   : > { %2536 = vmatmul.mubr.msk.bf16.vlgmr.msra.gmra.mrb[20].mxu1 %vm395_vm2, %v653_v41  ;;  %v1059_v41 = vrot.slane %v333_v39, %v1058_v38 }
 0x49c   : > { %2546 = vmatpush3.bf16.msra.mxu1 %v951_v42  ;;  %2547 = vmatprep.mubr.msk.bf16.mxu1 %vm2906_vm0, %v2905_v0 }
 0x49d   : > { %2557 = vmatprep.subr.bf16.mxu1 %v2905_v0 }
 0x4a3   : > { %2548 = vmatmul.mubr.msk.bf16.vlgmr.msra.gmra.mrb[24].mxu1 %vm395_vm2, %v944_v43 }
 0x4a4   : > { %2561 = vmatprep.mubr.msk.bf16.mxu1 %vm2906_vm0, %v2905_v0  ;;  %2558 = vmatpush3.bf16.msra.mxu1 %v2739_v6 }
 0x4a5   : > { %2559 = vmatprep.subr.bf16.mxu1 %v2905_v0 }
 0x4a8   : > { %2560 = vmatpush3.bf16.msra.mxu1 %v2740_v32 }
 0x4a9   : > { %2577 = vmatprep.subr.bf16.mxu1 %v2905_v0 }
 0x52d   : > { %v697_v47 = vpop.f32.mrb[12].mxu1 }
 0x52e   : > { %v703_v48 = vpack.c.bf16 %v697_v47, %v697_v47  ;;  %v2513_v49 = vpop.f32.mrb[13].mxu1  ;;  %v2743_v47 = vld [vmem:[%s3559_s5 + $0x10] sm:$0xff]  }
 0x52f   : > { %v700_v51 = vpop.f32.mrb[14].mxu1  ;;  %v1069_v49 = vsub.s32 2, %v3266_v37 }
 0x530   : > { %v2514_v52 = vpop.f32.mrb[15].mxu1  ;;  %2530 = vmatmul.mubr.msk.bf16.vlgmr.msra.gmra.mrb[12].mxu0 %vm395_vm2, %v703_v48  ;;  %v2744_v48 = vld [vmem:[%s3559_s5 + $0x18] sm:$0xff]  }
 0x531   : > { %2540 = vmatpush3.bf16.msra.mxu0 %v900_v50  ;;  %2541 = vmatprep.mubr.msk.bf16.mxu0 %vm2906_vm0, %v2905_v0  ;;  %v1070_v50 = vrot.slane %v333_v39, %v1069_v49 }
 0x532   : > { %2551 = vmatprep.subr.bf16.mxu0 %v2905_v0 }
 0x566   : > { %v795_v53 = vpop.f32.mrb[16].mxu1 }
 0x567   : > { %v2525_v54 = vpop.f32.mrb[17].mxu1 }
 0x568   : > { %v798_v55 = vpop.f32.mrb[18].mxu1 }
 0x569   : > { %v2526_v56 = vpop.f32.mrb[19].mxu1 }
 0x56e   : > { %v889_v58 = vpop.f32.mrb[20].mxu1 }
 0x56f   : > { %v895_v59 = vpack.c.bf16 %v889_v58, %v889_v58  ;;  %v2537_v60 = vpop.f32.mrb[21].mxu1  ;;  %v1130_v58 = vsub.s32 3, %v3266_v37 }
 0x570   : > { %v892_v62 = vpop.f32.mrb[22].mxu1 }
 0x571   : > { %v2538_v63 = vpop.f32.mrb[23].mxu1  ;;  %2542 = vmatmul.mubr.msk.bf16.vlgmr.msra.gmra.mrb[16].mxu0 %vm395_vm2, %v895_v59  ;;  %v1131_v59 = vrot.slane %v333_v39, %v1130_v58 }
 0x572   : > { %2552 = vmatpush3.bf16.msra.mxu0 %v998_v61  ;;  %2553 = vmatprep.mubr.msk.bf16.mxu0 %vm2906_vm0, %v2905_v0 }
 0x573   : > { %2565 = vmatprep.subr.bf16.mxu0 %v2905_v0 }
 0x576   : > { %v987_v1 = vpop.f32.mrb[24].mxu1 }
 0x577   : > { %v993_v2 = vpack.c.bf16 %v987_v1, %v987_v1  ;;  %v2549_v4 = vpop.f32.mrb[25].mxu1 }
 0x578   : > { %v990_v5 = vpop.f32.mrb[26].mxu1 }
 0x579   : > { %v2550_v7 = vpop.f32.mrb[27].mxu1  ;;  %2554 = vmatmul.mubr.msk.bf16.vlgmr.msra.gmra.mrb[20].mxu0 %vm395_vm2, %v993_v2 }
 0x57a   : > { %2573 = vmatprep.mubr.msk.bf16.mxu0 %vm2906_vm0, %v2905_v0 }
 0x603   : > { %v841_v8 = vpop.f32.mrb[12].mxu0 }
 0x604   : > { %v842_v9 = vadd.f32 %v841_v8, %v795_v53  ;;  %v2531_v10 = vpop.f32.mrb[13].mxu0 }
 0x605   : > { %v844_v11 = vpop.f32.mrb[14].mxu0 }
 0x606   : > { %v2532_v12 = vpop.f32.mrb[15].mxu0  ;;  %v2745_v11 = vld [vmem:[%s3556_s2 + $0x10] sm:$0xff]  }
 0x607   : > { %v2746_v12 = vld [vmem:[%s3556_s2 + $0x18] sm:$0xff]  }
 0x644   : > { %v936_v13 = vpop.f32.mrb[16].mxu0 }
 0x645   : > { %v942_v14 = vadd.f32 %v936_v13, %v842_v9  ;;  %v2543_v15 = vpop.f32.mrb[17].mxu0 }
 0x646   : > { %v939_v16 = vpop.f32.mrb[18].mxu0 }
 0x647   : > { %v2544_v17 = vpop.f32.mrb[19].mxu0  ;;  %v1216_v16 = vsub.s32 4, %v3266_v37 }
 0x648   : > { %v1221_v17 = vsub.s32 5, %v3266_v37 }
 0x64c   : > { %v1034_v18 = vpop.f32.mrb[20].mxu0 }
 0x64d   : > { %v1040_v19 = vadd.f32 %v1034_v18, %v942_v14  ;;  %v2555_v20 = vpop.f32.mrb[21].mxu0  ;;  %v1217_v18 = vrot.slane %v333_v39, %v1216_v16 }
 0x64e   : > { %v1037_v22 = vpop.f32.mrb[22].mxu0 }
 0x64f   : > { %v2556_v23 = vpop.f32.mrb[23].mxu0  ;;  %v1041_v24 = vadd.f32 %v1040_v19, %v3103_v3  ;;  %v2741_v3 = vld [vmem:[%s3559_s5] sm:$0xff]   ;;  %v1222_v22 = vrot.slane %v333_v39, %v1221_v17 }
 0x650   : > { %2566 = vmatpush3.bf16.msra.mxu0 %v2741_v3 }
 0x651   : > { %v1042_v25 = vsel %vm347_vm1, %v1041_v24, 0.0  ;;  %2567 = vmatprep.subr.bf16.mxu0 %v2905_v0 }
 0x652   : > { %1043 = vadd.xlane.f32.xlu0 %v1042_v25 }
 0x654   : > { %2568 = vmatpush3.bf16.msra.mxu0 %v2742_v33 }
 0x655   : > { %2569 = vmatprep.subr.bf16.mxu0 %v2905_v0 }
 0x658   : > { %2570 = vmatpush3.bf16.msra.mxu0 %v2743_v47 }
 0x659   : > { %2571 = vmatprep.subr.bf16.mxu0 %v2905_v0 }
 0x65c   : > { %2572 = vmatpush3.bf16.msra.mxu0 %v2744_v48 }
 0x65d   : > { %2591 = vmatprep.subr.bf16.mxu0 %v2905_v0 }
 0x6df   : > { %v1044_v26 = vpop.xlane.xlu0 %1043 }
 0x6e0   : > { %v1046_v27 = vmul.f32 0.03125, %v1044_v26 }
 0x6e2   : > { %v1047_v28 = vsub.f32 %v1041_v24, %v1046_v27 }
 0x6e4   : > { %v1048_v29 = vmul.f32 %v1047_v28, %v1047_v28 }
 0x6e6   : > { %v1049_v30 = vsel %vm347_vm1, %v1048_v29, 0.0 }
 0x6e7   : > { %1050 = vadd.xlane.f32.xlu1 %v1049_v30 }
 0x774   : > { %v1051_v34 = vpop.xlane.xlu1 %1050 }
 0x775   : > { %v1052_v35 = vmul.f32 0.03125, %v1051_v34 }
 0x777   : > { %v1053_v36 = vadd.f32 1e-05, %v1052_v35 }
 0x779   : > { %2769 = vrsqrt.f32 %v1053_v36 }
 0x783   : > { %v2770_v42 = vpop.eup %2769 }
 0x784   : > { %v1055_v43 = vmul.f32 %v2770_v42, %v1047_v28 }
 0x786   : > { %v1060_v45 = vmul.f32 %v1059_v41, %v1055_v43 }
 0x788   : > { %v1065_v46 = vadd.f32 %v1064_v44, %v1060_v45 }
 0x78a   : > { %v1066_v21 = vpack.c.bf16 %v1065_v46, %v1065_v46 }
 0x78c   : > { %2562 = vmatmul.mubr.msk.bf16.vlgmr.msra.gmra.mrb[28].mxu1 %vm347_vm1, %v1066_v21 }
 0x78d   : > { %2581 = vmatprep.mubr.msk.bf16.mxu1 %vm2906_vm0, %v2905_v0  ;;  %2578 = vmatpush3.bf16.msra.mxu1 %v2745_v11 }
 0x78e   : > { %2579 = vmatprep.subr.bf16.mxu1 %v2905_v0 }
 0x791   : > { %2580 = vmatpush3.bf16.msra.mxu1 %v2746_v12 }
 0x792   : > { %2585 = vmatprep.subr.bf16.mxu1 %v2905_v0 }
 0x85f   : > { %v1120_v51 = vpop.f32.mrb[28].mxu1 }
 0x860   : > { %v1121_v52 = vadd.f32 %v1120_v51, %v1070_v50  ;;  %v2563_v53 = vpop.f32.mrb[29].mxu1 }
 0x861   : > { %v1123_v54 = vpop.f32.mrb[30].mxu1 }
 0x862   : > { %v1126_v55 = vmax.f32 %v1121_v52, 0.0  ;;  %v2564_v56 = vpop.f32.mrb[31].mxu1 }
 0x864   : > { %v1127_v57 = vpack.c.bf16 %v1126_v55, %v1126_v55 }
 0x866   : > { %2574 = vmatmul.mubr.msk.bf16.vlgmr.msra.gmra.mrb[24].mxu0 %vm1156_vm5, %v1127_v57 }
 0x867   : > { %2593 = vmatprep.mubr.msk.bf16.mxu0 %vm2906_vm0, %v2905_v0 }
 0x939   : > { %v1194_v60 = vpop.f32.mrb[24].mxu0 }
 0x93a   : > { %v1195_v61 = vadd.f32 %v1194_v60, %v1131_v59  ;;  %v2575_v62 = vpop.f32.mrb[25].mxu0 }
 0x93b   : > { %v1197_v63 = vpop.f32.mrb[26].mxu0 }
 0x93c   : > { %v2576_v1 = vpop.f32.mrb[27].mxu0  ;;  %v1200_v2 = vadd.f32 %v1195_v61, %v1065_v46 }
 0x93e   : > { %v1201_v4 = vsel %vm347_vm1, %v1200_v2, 0.0 }
 0x93f   : > { %1202 = vadd.xlane.f32.xlu0 %v1201_v4 }
 0x9cc   : > { %v1203_v5 = vpop.xlane.xlu0 %1202 }
 0x9cd   : > { %v1204_v7 = vmul.f32 0.03125, %v1203_v5 }
 0x9cf   : > { %v1205_v8 = vsub.f32 %v1200_v2, %v1204_v7 }
 0x9d1   : > { %v1206_v9 = vmul.f32 %v1205_v8, %v1205_v8 }
 0x9d3   : > { %v1207_v10 = vsel %vm347_vm1, %v1206_v9, 0.0 }
 0x9d4   : > { %1208 = vadd.xlane.f32.xlu0 %v1207_v10 }
 0xa61   : > { %v1209_v13 = vpop.xlane.xlu0 %1208 }
 0xa62   : > { %v1210_v14 = vmul.f32 0.03125, %v1209_v13 }
 0xa64   : > { %v1211_v15 = vadd.f32 1e-05, %v1210_v14 }
 0xa66   : > { %2771 = vrsqrt.f32 %v1211_v15 }
 0xa70   : > { %v2772_v19 = vpop.eup %2771 }
 0xa71   : > { %v1213_v20 = vmul.f32 %v2772_v19, %v1205_v8 }
 0xa73   : > { %v1218_v23 = vmul.f32 %v1217_v18, %v1213_v20 }
 0xa75   : > { %v3313_v24 = vadd.f32 %v1222_v22, %v1218_v23 }
 0xa77   : > { %v1250_v25 = vpack.c.bf16 %v3313_v24, %v3313_v24 }
 0xa79   : > { %2582 = vmatmul.mubr.msk.bf16.vlgmr.msra.gmra.mrb[32].mxu1 %vm347_vm1, %v1250_v25 }
 0xa7a   : > { %2587 = vmatprep.mubr.msk.bf16.mxu1 %vm2906_vm0, %v2905_v0 }
 0xb4c   : > { %v1300_v26 = vpop.f32.mrb[32].mxu1 }
 0xb4d   : > { %v3320_v27 = vpack.c.bf16 %v1300_v26, %v1300_v26  ;;  %v2583_v28 = vpop.f32.mrb[33].mxu1 }
 0xb4e   : > { %v1303_v29 = vpop.f32.mrb[34].mxu1 }
 0xb4f   : > { %1359 = vrot.lane.b32.xlu1 %v3320_v27, %s2910_s10  ;;  %1308 = vrot.lane.b32.xlu0 %v3320_v27, %s2908_s9  ;;  %v2584_v30 = vpop.f32.mrb[35].mxu1  ;;  %s3585_s9 = smov 64   ;;  %s3587_s10 = smov 48  }
 0xb53   : > { %1357 = vrot.lane.b32.xlu1 %v3320_v27, %s2907_s25  ;;  %1410 = vrot.lane.b32.xlu0 %v3320_v27, %s2909_s28  ;;  %s3584_s25 = smov 56   ;;  %s3586_s28 = smov 40  }
 0xb57   : > { %1461 = vrot.lane.b32.xlu1 %v3320_v27, %s3581_s12  ;;  %1408 = vrot.lane.b32.xlu0 %v3320_v27, %s3582_s22  ;;  %s2138_s12 = scalar_lea.sflag [#allocation7], %s3081_s21 }
 0xb5b   : > { %1459 = vrot.lane.b32.xlu1 %v3320_v27, %s3583_s24  ;;  %s2918_s24 = smov [#allocation8]  }
 0xbc1   : > { %v1360_v6 = vpop.permute.xlu1 %1359  ;;  %v1309_v32 = vpop.permute.xlu0 %1308 }
 0xbc2   : > { %v1365_v3 = vsel %vm395_vm2, %v1360_v6, 0  ;;  %v1314_v33 = vsel %vm395_vm2, %v1309_v32, 0 }
 0xbc3   : > { %2586 = vmatpush3.bf16.xpose.msra.mxu1 %v1314_v33  ;;  %2592 = vmatpush3.bf16.xpose.msra.mxu0 %v1365_v3 }
 0xbc4   : > { %2597 = vmatprep.subr.bf16.mxu1 %v2905_v0  ;;  %2603 = vmatprep.subr.bf16.mxu0 %v2905_v0 }
 0xbc5   : > { %v1358_v34 = vpop.permute.xlu1 %1357  ;;  %v1411_v35 = vpop.permute.xlu0 %1410 }
 0xbc6   : > { %v1416_v39 = vsel %vm395_vm2, %v1411_v35, 0 }
 0xbc9   : > { %v1462_v36 = vpop.permute.xlu1 %1461  ;;  %v1409_v42 = vpop.permute.xlu0 %1408 }
 0xbca   : > { %v1467_v41 = vsel %vm395_vm2, %v1462_v36, 0  ;;  %2588 = vmatmul.mubr.msk.bf16.vlgmr.msra.gmra.mrb[36].mxu1 %vm395_vm2, %v3320_v27  ;;  %2594 = vmatmul.mubr.msk.bf16.vlgmr.msra.gmra.mrb[28].mxu0 %vm395_vm2, %v1358_v34 }
 0xbcb   : > { %2598 = vmatpush3.bf16.xpose.msra.mxu1 %v1416_v39  ;;  %2604 = vmatpush3.bf16.xpose.msra.mxu0 %v1467_v41 }
 0xbcc   : > { %2599 = vmatprep.mubr.msk.bf16.mxu1 %vm2906_vm0, %v2905_v0  ;;  %2605 = vmatprep.mubr.msk.bf16.mxu0 %vm2906_vm0, %v2905_v0 }
 0xbcd   : > { %2615 = vmatprep.subr.bf16.mxu0 %v2905_v0  ;;  %2609 = vmatprep.subr.bf16.mxu1 %v2905_v0  ;;  %v1460_v43 = vpop.permute.xlu1 %1459 }
 0xbd2   : > { %2600 = vmatmul.mubr.msk.bf16.vlgmr.msra.gmra.mrb[40].mxu1 %vm395_vm2, %v1409_v42  ;;  %2606 = vmatmul.mubr.msk.bf16.vlgmr.msra.gmra.mrb[32].mxu0 %vm395_vm2, %v1460_v43 }
 0xbd3   : > { %2611 = vmatprep.mubr.msk.bf16.mxu1 %vm2906_vm0, %v2905_v0  ;;  %2617 = vmatprep.mubr.msk.bf16.mxu0 %vm2906_vm0, %v2905_v0 }
 0xc9d   : > { %v1350_v44 = vpop.f32.mrb[36].mxu1  ;;  %v1401_v45 = vpop.f32.mrb[28].mxu0 }
 0xc9e   : > { %1356 = vst.msk [vmem:[#allocation2] sm:$0xff] %vm395_vm2, %v1350_v44  ;;  %1407 = vst.msk [vmem:[#allocation2 + $0x8] sm:$0xff] %vm395_vm2, %v1401_v45  ;;  %v2589_v46 = vpop.f32.mrb[37].mxu1  ;;  %v2595_v21 = vpop.f32.mrb[29].mxu0 }
 0xc9f   : > { %v1353_v47 = vpop.f32.mrb[38].mxu1  ;;  %v1404_v48 = vpop.f32.mrb[30].mxu0 }
 0xca0   : > { %v2590_v50 = vpop.f32.mrb[39].mxu1  ;;  %v2596_v51 = vpop.f32.mrb[31].mxu0 }
 0xca1   : > { %v2356_v50 = vld [vmem:[%s3557_s3 + $0x14] sm:$0xf] }
 0xca2   : > { %v1673_v51 = vsel %vm659_vm4, %v2356_v50, 0 }
 0xca5   : > { %v1452_v52 = vpop.f32.mrb[40].mxu1  ;;  %v1503_v53 = vpop.f32.mrb[32].mxu0  ;;  %v1511_v54 = vld [vmem:[#allocation2 + $0x8] sm:$0xff]  ;;  %v1510_v55 = vld [vmem:[#allocation2] sm:$0xff] }
 0xca6   : > { %1458 = vst.msk [vmem:[#allocation2 + $0x10] sm:$0xff] %vm395_vm2, %v1452_v52  ;;  %1509 = vst.msk [vmem:[#allocation2 + $0x18] sm:$0xff] %vm395_vm2, %v1503_v53  ;;  %v2601_v56 = vpop.f32.mrb[41].mxu1  ;;  %v2607_v57 = vpop.f32.mrb[33].mxu0  ;;  %v1515_v59 = vsel %vm3153_vm3, %v1511_v54, -1000000.0 }
 0xca7   : > { %v1514_v60 = vsel %vm3153_vm3, %v1510_v55, -1000000.0  ;;  %v1455_v61 = vpop.f32.mrb[42].mxu1  ;;  %v1506_v62 = vpop.f32.mrb[34].mxu0  ;;  %v1521_v63 = vsel %vm395_vm2, %v1515_v59, -inf }
 0xca8   : > { %v1518_v1 = vsel %vm395_vm2, %v1514_v60, -inf  ;;  %1522 = vmax.xlane.f32.xlu1 %v1521_v63  ;;  %v2608_v2 = vpop.f32.mrb[35].mxu0  ;;  %v2602_v4 = vpop.f32.mrb[43].mxu1  ;;  %v2355_v52 = vld [vmem:[%s3557_s3 + $0x10] sm:$0xf] }
 0xca9   : > { %1519 = vmax.xlane.f32.xlu0 %v1518_v1  ;;  %v1719_v53 = vsel %vm659_vm4, %v2355_v52, 0 }
 0xcad   : > { %v1512_v22 = vld [vmem:[#allocation2 + $0x10] sm:$0xff]  ;;  %v1513_v26 = vld [vmem:[#allocation2 + $0x18] sm:$0xff] }
 0xcae   : > { %v1516_v25 = vsel %vm3153_vm3, %v1512_v22, -1000000.0  ;;  %v1517_v29 = vsel %vm3153_vm3, %v1513_v26, -1000000.0 }
 0xcaf   : > { %v1524_v28 = vsel %vm395_vm2, %v1516_v25, -inf  ;;  %v1527_v30 = vsel %vm395_vm2, %v1517_v29, -inf }
 0xcb9   : > { %1620 = vrot.lane.b32.xlu1 %v3320_v27, %s3584_s25  ;;  %s2837_s25 = sshll.u32 %s2918_s24, 4  ;;  %s2838_s25 = int_to_ptr.vmem [resolvable:$false] %s2837_s25 }
 0xcbd   : > { %1569 = vrot.lane.b32.xlu1 %v3320_v27, %s3585_s9  ;;  %s2839_s9 = scalar_lea.vmem %s2838_s25, 256 }
 0xcc1   : > { %1859 = vrot.lane.b32.xlu1 %v3320_v27, %s3586_s28  ;;  %s2401_s28 = sshll.u32 %s2997_s0, 7 }
 0xcc2   : > { %s3495_s11 = scalar_lea.hbm %s3561_s7, %s2401_s28 }
 0xd35   : > { %v1523_v5 = vpop.xlane.xlu1 %1522 }
 0xd36   : > { %v1520_v7 = vpop.xlane.xlu0 %1519  ;;  %v1531_v8 = vsub.f32 %v1515_v59, %v1523_v5 }
 0xd37   : > { %v1530_v9 = vsub.f32 %v1514_v60, %v1520_v7 }
 0xd38   : > { %v1536_v11 = vmul.f32 1.442695, %v1531_v8 }
 0xd39   : > { %v1534_v10 = vmul.f32 1.442695, %v1530_v9  ;;  %v1621_v12 = vpop.permute.xlu1 %1620 }
 0xd3a   : > { %v1626_v13 = vsel %vm659_vm4, %v1621_v12, 0 }
 0xd3b   : > { %2773 = vpow2.f32 %v1534_v10  ;;  %2616 = vmatpush3.bf16.msra.mxu0 %v1626_v13 }
 0xd3c   : > { %2627 = vmatprep.subr.bf16.mxu0 %v2905_v0  ;;  %2775 = vpow2.f32 %v1536_v11 }
 0xd3d   : > { %v1570_v14 = vpop.permute.xlu1 %1569 }
 0xd3e   : > { %v1575_v15 = vsel %vm659_vm4, %v1570_v14, 0 }
 0xd3f   : > { %2610 = vmatpush3.bf16.msra.mxu1 %v1575_v15  ;;  %v2357_v15 = vld [vmem:[%s3557_s3 + $0x18] sm:$0xf] }
 0xd40   : > { %2621 = vmatprep.subr.bf16.mxu1 %v2905_v0 }
 0xd41   : > { %v1860_v11 = vpop.permute.xlu1 %1859 }
 0xd42   : > { %v1865_v13 = vsel %vm659_vm4, %v1860_v11, 0 }
 0xd45   : > { %v2774_v18 = vpop.eup %2773 }
 0xd46   : > { %v1542_v19 = vsel %vm395_vm2, %v2774_v18, 0.0  ;;  %v2776_v20 = vpop.eup %2775 }
 0xd47   : > { %1543 = vadd.xlane.f32.xlu0 %v1542_v19  ;;  %v1545_v23 = vsel %vm395_vm2, %v2776_v20, 0.0 }
 0xd4b   : > { %1546 = vadd.xlane.f32.xlu0 %v1545_v23 }
 0xd4f   : > { %1525 = vmax.xlane.f32.xlu0 %v1524_v28 }
 0xd53   : > { %1528 = vmax.xlane.f32.xlu0 %v1527_v30 }
 0xdd4   : > { %v1544_v6 = vpop.xlane.xlu0 %1543 }
 0xdd5   : > { %2777 = vrcp.f32 %v1544_v6  ;;  %v2358_v6 = vld [vmem:[%s3557_s3 + $0x1c] sm:$0xf] }
 0xdd8   : > { %v1547_v32 = vpop.xlane.xlu0 %1546 }
 0xdd9   : > { %2779 = vrcp.f32 %v1547_v32 }
 0xddc   : > { %v1526_v3 = vpop.xlane.xlu0 %1525 }
 0xddd   : > { %v1532_v33 = vsub.f32 %v1516_v25, %v1526_v3 }
 0xddf   : > { %v2778_v34 = vpop.eup %2777  ;;  %v1538_v35 = vmul.f32 1.442695, %v1532_v33 }
 0xde0   : > { %v1558_v36 = vmul.f32 %v2778_v34, %v2774_v18  ;;  %v1529_v39 = vpop.xlane.xlu0 %1528  ;;  %v1814_v18 = vsel %vm659_vm4, %v2357_v15, 0  ;;  %v1912_v34 = vsel %vm659_vm4, %v2358_v6, 0 }
 0xde1   : > { %2781 = vpow2.f32 %v1538_v35  ;;  %v1533_v41 = vsub.f32 %v1517_v29, %v1529_v39 }
 0xde2   : > { %2379 = vst.msk [vmem:[%s3182_s14 + $0x20] sm:$0xff] %vm395_vm2, %v1558_v36 }
 0xde3   : > { %v2780_v31 = vpop.eup %2779  ;;  %v1540_v42 = vmul.f32 1.442695, %v1533_v41 }
 0xde4   : > { %v1559_v43 = vmul.f32 %v2780_v31, %v2776_v20 }
 0xde5   : > { %2783 = vpow2.f32 %v1540_v42 }
 0xde6   : > { %2380 = vst.msk [vmem:[%s3182_s14 + $0x28] sm:$0xff] %vm395_vm2, %v1559_v43  ;;  %v1567_v44 = vpack.c.bf16 %v1559_v43, %v1558_v36 }
 0xde8   : > { %2612 = vmatmul.mubr.msk.bf16.vlgmr.msra.gmra.mrb[44].mxu1 %vm395_vm2, %v1567_v44  ;;  %v1619_v45 = vrot.slane %v1567_v44, 4 }
 0xde9   : > { %2623 = vmatprep.mubr.msk.bf16.mxu1 %vm2906_vm0, %v2905_v0  ;;  %2622 = vmatpush3.bf16.msra.mxu1 %v1673_v51 }
 0xdea   : > { %2618 = vmatmul.mubr.msk.bf16.vlgmr.msra.gmra.mrb[36].mxu0 %vm395_vm2, %v1619_v45  ;;  %2633 = vmatprep.subr.bf16.mxu1 %v2905_v0 }
 0xdeb   : > { %v2782_v46 = vpop.eup %2781  ;;  %2629 = vmatprep.mubr.msk.bf16.mxu0 %vm2906_vm0, %v2905_v0  ;;  %2628 = vmatpush3.bf16.msra.mxu0 %v1719_v53 }
 0xdec   : > { %v1548_v21 = vsel %vm395_vm2, %v2782_v46, 0.0  ;;  %2639 = vmatprep.subr.bf16.mxu0 %v2905_v0 }
 0xded   : > { %1549 = vadd.xlane.f32.xlu0 %v1548_v21 }
 0xdef   : > { %v2784_v47 = vpop.eup %2783 }
 0xdf0   : > { %v1551_v48 = vsel %vm395_vm2, %v2784_v47, 0.0 }
 0xdf1   : > { %1552 = vadd.xlane.f32.xlu0 %v1551_v48 }
 0xe07   : > { %1761 = vrot.lane.b32.xlu0 %v3320_v27, %s3587_s10  ;;  %s3588_s10 = sshll.u32 %s3081_s21, 3 }
 0xe08   : > { %s299_s13 = scalar_lea.vmem [#allocation8], %s3588_s10 }
 0xe09   : > { %s2155_s19 = sshll.u32 %s299_s13, 4  ;;  %s3497_s19 = int_to_ptr.vmem [resolvable:$true] %s2155_s19 }
 0xe0a   : > { %s2833_s22 = scalar_lea.vmem %s3497_s19, 128  ;;  %p2840_p10 = scmp.lt.s32.totalorder %s3497_s19, %s2838_s25 }
 0xe0b   : > { %p2834_p9 = scmp.ne.s32.totalorder %s3497_s19, %s2833_s22  ;;  %p2841_p13 = scmp.lt.s32.totalorder %s2839_s9, %s2833_s22 }
 0xe0d   : > { %p2835_p1 = pnand %p2834_p9, %p3589_p0  ;;  %p2842_p5 = por %p2841_p13, %p2840_p10 }
 0xe0f   : > { %p2836_p2 = pneg %p2835_p1 }
 0xe11   : > { %p2843_p7 = pnand %p2842_p5, %p2836_p2 }
 0xe7a   : > { %v1550_v27 = vpop.xlane.xlu0 %1549 }
 0xe7b   : > { %2785 = vrcp.f32 %v1550_v27 }
 0xe7e   : > { %v1553_v54 = vpop.xlane.xlu0 %1552 }
 0xe7f   : > { %2787 = vrcp.f32 %v1553_v54 }
 0xe82   : > { %v1762_v61 = vpop.permute.xlu0 %1761 }
 0xe83   : > { %v1767_v9 = vsel %vm659_vm4, %v1762_v61, 0  ;;  %v2747_v61 = vld [vmem:[%s3558_s4 + $0x10] sm:$0xff]  }
 0xe85   : > { %v2786_v55 = vpop.eup %2785 }
 0xe86   : > { %v1560_v56 = vmul.f32 %v2786_v55, %v2782_v46 }
 0xe88   : > { %2381 = vst.msk [vmem:[%s3182_s14 + $0x30] sm:$0xff] %vm395_vm2, %v1560_v56 }
 0xe89   : > { %v2788_v57 = vpop.eup %2787 }
 0xe8a   : > { %v1561_v59 = vmul.f32 %v2788_v57, %v2784_v47 }
 0xe8c   : > { %2382 = vst.msk [vmem:[%s3182_s14 + $0x38] sm:$0xff] %vm395_vm2, %v1561_v59  ;;  %v1568_v12 = vpack.c.bf16 %v1561_v59, %v1560_v56 }
 0xe8e   : > { %v1858_v14 = vrot.slane %v1568_v12, 4 }
 0xebb   : > { %v1611_v60 = vpop.f32.mrb[44].mxu1 }
 0xebc   : > { %v1617_v62 = vpack.c.bf16 %v1611_v60, %v1611_v60  ;;  %v2613_v63 = vpop.f32.mrb[45].mxu1 }
 0xebd   : > { %v1614_v1 = vpop.f32.mrb[46].mxu1  ;;  %v1662_v2 = vpop.f32.mrb[36].mxu0  ;;  %v2750_v63 = vld [vmem:[%s3559_s5 + $0x28] sm:$0xff]  }
 0xebe   : > { %v1668_v4 = vpack.c.bf16 %v1662_v2, %v1662_v2  ;;  %v2614_v5 = vpop.f32.mrb[47].mxu1  ;;  %v2619_v7 = vpop.f32.mrb[37].mxu0  ;;  %2630 = vmatmul.mubr.msk.bf16.vlgmr.msra.gmra.mrb[40].mxu0 %vm395_vm2, %v1617_v62  ;;  %v2748_v62 = vld [vmem:[%s3558_s4 + $0x18] sm:$0xff]  }
 0xebf   : > { %v1665_v8 = vpop.f32.mrb[38].mxu0  ;;  %2641 = vmatprep.mubr.msk.bf16.mxu0 %vm2906_vm0, %v2905_v0  ;;  %2640 = vmatpush3.bf16.msra.mxu0 %v1814_v18  ;;  %v2371_v5 = vld [vmem:[%s3560_s6 + $0x8] sm:$0xff] }
 0xec0   : > { %v2620_v10 = vpop.f32.mrb[39].mxu0  ;;  %2624 = vmatmul.mubr.msk.bf16.vlgmr.msra.gmra.mrb[48].mxu1 %vm395_vm2, %v1668_v4  ;;  %2651 = vmatprep.subr.bf16.mxu0 %v2905_v0  ;;  %v1972_v7 = vrot.slane %v2371_v5, %v1058_v38  ;;  %v2752_v38 = vld [vmem:[%s3559_s5 + $0x38] sm:$0xff]  }
 0xec1   : > { %2634 = vmatpush3.bf16.msra.mxu1 %v1767_v9  ;;  %2635 = vmatprep.mubr.msk.bf16.mxu1 %vm2906_vm0, %v2905_v0  ;;  %v1977_v10 = vrot.slane %v2371_v5, %v1063_v40  ;;  %v1983_v40 = vrot.slane %v2371_v5, %v1069_v49 }
 0xec2   : > { %2645 = vmatprep.subr.bf16.mxu1 %v2905_v0 }
 0xec8   : > { %2636 = vmatmul.mubr.msk.bf16.vlgmr.msra.gmra.mrb[52].mxu1 %vm395_vm2, %v1568_v12 }
 0xec9   : > { %2646 = vmatpush3.bf16.msra.mxu1 %v1865_v13  ;;  %2647 = vmatprep.mubr.msk.bf16.mxu1 %vm2906_vm0, %v2905_v0 }
 0xeca   : > { %2657 = vmatprep.subr.bf16.mxu1 %v2905_v0 }
 0xed0   : > { %2648 = vmatmul.mubr.msk.bf16.vlgmr.msra.gmra.mrb[56].mxu1 %vm395_vm2, %v1858_v14  ;;  %v2751_v14 = vld [vmem:[%s3559_s5 + $0x30] sm:$0xff]  }
 0xed1   : > { %2661 = vmatprep.mubr.msk.bf16.mxu1 %vm2906_vm0, %v2905_v0  ;;  %2658 = vmatpush3.bf16.msra.mxu1 %v2747_v61 }
 0xed2   : > { %2659 = vmatprep.subr.bf16.mxu1 %v2905_v0 }
 0xed5   : > { %2660 = vmatpush3.bf16.msra.mxu1 %v2748_v62 }
 0xf91   : > { %v1755_v19 = vpop.f32.mrb[40].mxu0 }
 0xf92   : > { %v2631_v20 = vpop.f32.mrb[41].mxu0 }
 0xf93   : > { %v1709_v22 = vpop.f32.mrb[48].mxu1  ;;  %v1758_v23 = vpop.f32.mrb[42].mxu0 }
 0xf94   : > { %v1756_v25 = vadd.f32 %v1755_v19, %v1709_v22  ;;  %v2625_v26 = vpop.f32.mrb[49].mxu1  ;;  %v2632_v28 = vpop.f32.mrb[43].mxu0 }
 0xf95   : > { %v1712_v29 = vpop.f32.mrb[50].mxu1 }
 0xf96   : > { %v2626_v30 = vpop.f32.mrb[51].mxu1 }
 0xf9b   : > { %v1803_v32 = vpop.f32.mrb[52].mxu1 }
 0xf9c   : > { %v1809_v3 = vpack.c.bf16 %v1803_v32, %v1803_v32  ;;  %v2637_v33 = vpop.f32.mrb[53].mxu1 }
 0xf9d   : > { %v1806_v35 = vpop.f32.mrb[54].mxu1 }
 0xf9e   : > { %v2638_v36 = vpop.f32.mrb[55].mxu1  ;;  %2642 = vmatmul.mubr.msk.bf16.vlgmr.msra.gmra.mrb[44].mxu0 %vm395_vm2, %v1809_v3 }
 0xf9f   : > { %2652 = vmatpush3.bf16.msra.mxu0 %v1912_v34  ;;  %2653 = vmatprep.mubr.msk.bf16.mxu0 %vm2906_vm0, %v2905_v0 }
 0xfa0   : > { %2665 = vmatprep.subr.bf16.mxu0 %v2905_v0 }
 0xfa3   : > { %v1901_v39 = vpop.f32.mrb[56].mxu1 }
 0xfa4   : > { %v1907_v41 = vpack.c.bf16 %v1901_v39, %v1901_v39  ;;  %v2649_v31 = vpop.f32.mrb[57].mxu1 }
 0xfa5   : > { %v1904_v42 = vpop.f32.mrb[58].mxu1  ;;  %v2129_v31 = vrot.slane %v2371_v5, %v1216_v16 }
 0xfa6   : > { %v2650_v43 = vpop.f32.mrb[59].mxu1  ;;  %2654 = vmatmul.mubr.msk.bf16.vlgmr.msra.gmra.mrb[48].mxu0 %vm395_vm2, %v1907_v41 }
 0xfa7   : > { %2673 = vmatprep.mubr.msk.bf16.mxu0 %vm2906_vm0, %v2905_v0 }
0x1071   : > { %v1850_v44 = vpop.f32.mrb[44].mxu0 }
0x1072   : > { %v1856_v45 = vadd.f32 %v1850_v44, %v1756_v25  ;;  %v2643_v46 = vpop.f32.mrb[45].mxu0  ;;  %v2134_v44 = vrot.slane %v2371_v5, %v1221_v17 }
0x1073   : > { %v1853_v21 = vpop.f32.mrb[46].mxu0 }
0x1074   : > { %v2644_v47 = vpop.f32.mrb[47].mxu0 }
0x1079   : > { %v1948_v48 = vpop.f32.mrb[48].mxu0 }
0x107a   : > { %v1954_v50 = vadd.f32 %v1948_v48, %v1856_v45  ;;  %v2655_v51 = vpop.f32.mrb[49].mxu0 }
0x107b   : > { %v1951_v52 = vpop.f32.mrb[50].mxu0 }
0x107c   : > { %v2656_v53 = vpop.f32.mrb[51].mxu0  ;;  %v1955_v27 = vadd.f32 %v1954_v50, %v3313_v24  ;;  %v2749_v24 = vld [vmem:[%s3559_s5 + $0x20] sm:$0xff]  }
0x107d   : > { %2666 = vmatpush3.bf16.msra.mxu0 %v2749_v24 }
0x107e   : > { %v1956_v54 = vsel %vm347_vm1, %v1955_v27, 0.0  ;;  %2667 = vmatprep.subr.bf16.mxu0 %v2905_v0 }
0x107f   : > { %1957 = vadd.xlane.f32.xlu1 %v1956_v54 }
0x1081   : > { %2668 = vmatpush3.bf16.msra.mxu0 %v2750_v63 }
0x1082   : > { %2669 = vmatprep.subr.bf16.mxu0 %v2905_v0 }
0x1085   : > { %2670 = vmatpush3.bf16.msra.mxu0 %v2751_v14 }
0x1086   : > { %2671 = vmatprep.subr.bf16.mxu0 %v2905_v0  ;;  %v2044_v0 = vrot.slane %v2371_v5, %v1130_v58 }
0x1089   : > { %2672 = vmatpush3.bf16.msra.mxu0 %v2752_v38 }
0x110c   : > { %v1958_v55 = vpop.xlane.xlu1 %1957 }
0x110d   : > { %v1959_v56 = vmul.f32 0.03125, %v1958_v55 }
0x110f   : > { %v1960_v57 = vsub.f32 %v1955_v27, %v1959_v56 }
0x1111   : > { %v1961_v59 = vmul.f32 %v1960_v57, %v1960_v57 }
0x1113   : > { %v1962_v60 = vsel %vm347_vm1, %v1961_v59, 0.0 }
0x1114   : > { %1963 = vadd.xlane.f32.xlu0 %v1962_v60 }
0x11a1   : > { %v1964_v1 = vpop.xlane.xlu0 %1963 }
0x11a2   : > { %v1965_v2 = vmul.f32 0.03125, %v1964_v1 }
0x11a4   : > { %v1966_v4 = vadd.f32 1e-05, %v1965_v2 }
0x11a6   : > { %2789 = vrsqrt.f32 %v1966_v4 }
0x11b0   : > { %v2790_v8 = vpop.eup %2789 }
0x11b1   : > { %v1968_v9 = vmul.f32 %v2790_v8, %v1960_v57 }
0x11b3   : > { %v1973_v11 = vmul.f32 %v1972_v7, %v1968_v9 }
0x11b5   : > { %v1978_v12 = vadd.f32 %v1977_v10, %v1973_v11 }
0x11b7   : > { %v1979_v13 = vpack.c.bf16 %v1978_v12, %v1978_v12 }
0x11b9   : > { %2662 = vmatmul.mubr.msk.bf16.vlgmr.msra.gmra.mrb[60].mxu1 %vm347_vm1, %v1979_v13 }
0x128c   : > { %v2033_v15 = vpop.f32.mrb[60].mxu1 }
0x128d   : > { %v2034_v18 = vadd.f32 %v2033_v15, %v1983_v40  ;;  %v2663_v19 = vpop.f32.mrb[61].mxu1 }
0x128e   : > { %v2036_v20 = vpop.f32.mrb[62].mxu1 }
0x128f   : > { %v2039_v22 = vmax.f32 %v2034_v18, 0.0  ;;  %v2664_v23 = vpop.f32.mrb[63].mxu1 }
0x1291   : > { %v2040_v25 = vpack.c.bf16 %v2039_v22, %v2039_v22 }
0x1293   : > { %2674 = vmatmul.mubr.msk.bf16.vlgmr.msra.gmra.mrb[52].mxu0 %vm1156_vm5, %v2040_v25 }
0x1366   : > { %v2106_v26 = vpop.f32.mrb[52].mxu0 }
0x1367   : > { %v2107_v28 = vadd.f32 %v2106_v26, %v2044_v0  ;;  %v2675_v29 = vpop.f32.mrb[53].mxu0 }
0x1368   : > { %v2109_v30 = vpop.f32.mrb[54].mxu0 }
0x1369   : > { %v2676_v6 = vpop.f32.mrb[55].mxu0  ;;  %v2112_v32 = vadd.f32 %v2107_v28, %v1978_v12 }
0x136b   : > { %v2113_v49 = vsel %vm347_vm1, %v2112_v32, 0.0 }
0x136c   : > { %2114 = vadd.xlane.f32.xlu1 %v2113_v49 }
0x13f9   : > { %v2115_v3 = vpop.xlane.xlu1 %2114 }
0x13fa   : > { %v2116_v33 = vmul.f32 0.03125, %v2115_v3 }
0x13fc   : > { %v2117_v34 = vsub.f32 %v2112_v32, %v2116_v33 }
0x13fe   : > { %v2118_v35 = vmul.f32 %v2117_v34, %v2117_v34 }
0x1400   : > { %v2119_v36 = vsel %vm347_vm1, %v2118_v35, 0.0 }
0x1401   : > { %2120 = vadd.xlane.f32.xlu1 %v2119_v36 }
0x148e   : > { %v2121_v39 = vpop.xlane.xlu1 %2120 }
0x148f   : > { %v2122_v58 = vmul.f32 0.03125, %v2121_v39 }
0x1491   : > { %v2123_v41 = vadd.f32 1e-05, %v2122_v58 }
0x1493   : > { %2791 = vrsqrt.f32 %v2123_v41 }
0x149d   : > { %v2792_v42 = vpop.eup %2791 }
0x149e   : > { %v2125_v43 = vmul.f32 %v2792_v42, %v2117_v34 }
0x14a0   : > { %v2130_v45 = vmul.f32 %v2129_v31, %v2125_v43 }
0x14a2   : > { %v2135_v46 = vadd.f32 %v2134_v44, %v2130_v45 }
0x14a4   : > { %2136 = vst.msk [vmem:[%s299_s13] sm:$0xff] %vm347_vm1, %v2135_v46 }
0x14a5   : > { %2846 = shalt.err (!%p2843_p7)
}
0x14a6   : > { %s2847_s21 = scalar_lea.hbm %s3495_s11, 128  ;;  %s2851_s13 = scalar_lea.hbm %s3561_s7, 256 }
0x14a7   : > { %p2848_p8 = scmp.ne.s32.totalorder %s3495_s11, %s2847_s21  ;;  %p2852_p3 = scmp.lt.u32.totalorder %s3495_s11, %s3561_s7 }
0x14a8   : > { %p2853_p4 = scmp.lt.u32.totalorder %s2851_s13, %s2847_s21  ;;  %p2855_p9 = scmp.lt.u32.totalorder %s2847_s21, %s3495_s11 }
0x14a9   : > { %p2849_p11 = pnand %p2848_p8, %p3589_p0 }
0x14aa   : > { %p2854_p6 = por %p2853_p4, %p2852_p3 }
0x14ab   : > { %p2850_p12 = pneg %p2849_p11 }
0x14ac   : > { %p2856_p1 = por %p2855_p9, %p2854_p6 }
0x14ae   : > { %p2857_p2 = pnand %p2856_p1, %p2850_p12 }
0x14b0   : > { %2860 = shalt.err (!%p2857_p2)
}
0x14b1   : > { %2679 = dma.vmem_to_hbm [thread:$0]  (%p3589_p0), %s3497_s19, 128, %s3495_s11, %s2138_s12   ;;  %v2206_v37 = vld [vmem:[%s3182_s14] sm:$0xff] (%p3589_p0)  ;;  %v2208_v16 = vld [vmem:[%s3182_s14 + $0x8] sm:$0xff] (%p3589_p0)  ;;  %v2210_v17 = vld [vmem:[%s3182_s14 + $0x10] sm:$0xff] (%p3589_p0) }
0x14b2   : > { %2161 = sbr.rel (!%p3589_p0) target bundleno = 5305 (0x14b9), region = 56  ;;  %s2406_s22 = sshll.u32 (%p3589_p0), %s2997_s0, 5  ;;  %v2212_v21 = vld [vmem:[%s3182_s14 + $0x18] sm:$0xff] (%p3589_p0)  ;;  %v2214_v47 = vld [vmem:[%s3182_s14 + $0x20] sm:$0xff] (%p3589_p0)  ;;  %v2216_v48 = vld [vmem:[%s3182_s14 + $0x28] sm:$0xff] (%p3589_p0) }
0x14b3   : > { %s2164_s19 = scalar_lea.vmem (%p3589_p0), %s3562_s8, %s2406_s22  ;;  %v2218_v50 = vld [vmem:[%s3182_s14 + $0x30] sm:$0xff] (%p3589_p0)  ;;  %v2220_v51 = vld [vmem:[%s3182_s14 + $0x38] sm:$0xff] (%p3589_p0) }
0x14b4   : > { %2207 = vst [vmem:[%s2164_s19] sm:$0xff] (%p3589_p0), %v2206_v37  ;;  %2209 = vst [vmem:[%s2164_s19 + $0x8] sm:$0xff] (%p3589_p0), %v2208_v16 }
0x14b5   : > { %2211 = vst [vmem:[%s2164_s19 + $0x10] sm:$0xff] (%p3589_p0), %v2210_v17  ;;  %2213 = vst [vmem:[%s2164_s19 + $0x18] sm:$0xff] (%p3589_p0), %v2212_v21 }
0x14b6   : > { %2215 = vst [vmem:[%s2164_s19 + $0x40] sm:$0xff] (%p3589_p0), %v2214_v47  ;;  %2217 = vst [vmem:[%s2164_s19 + $0x48] sm:$0xff] (%p3589_p0), %v2216_v48 }
0x14b7   : > { %2219 = vst [vmem:[%s2164_s19 + $0x50] sm:$0xff] (%p3589_p0), %v2218_v50  ;;  %2221 = vst [vmem:[%s2164_s19 + $0x58] sm:$0xff] (%p3589_p0), %v2220_v51 }
0x14b9 PF: > { %s2233_s0 = sand.u32 1, %s2889_s15   ;;  %p3590_p0 = scmp.ne.s32.totalorder %s3575_s27, 0 }
0x14ba   : > { %p3591_p10 = scmp.ge.s32.totalorder %s2901_s18, 2  ;;  %s2234_s26 = scalar_lea.sflag [#allocation7], %s2233_s0 }
0x14bc   : > { %p2686_p13 = pnand %p3591_p10, %p3590_p0 }
0x14be   : > { %2884 = dma.done.wait (!%p2686_p13), %s2234_s26, 128  }
0x14bf   : > { %2886 = vsyncadd (!%p2686_p13), %s2234_s26, 4294967168  ;;  %p26_p5 = scmp.ge.s32.totalorder %s3001_s20, 4   ;;  %s3592_s15 = smov %s2893_s16 }
0x14c0   : > { %s3593_s16 = smov %s2897_s17  ;;  %s3594_s17 = smov %s3013_s23 }
0x14c1   : > { %s3595_s18 = smov %s3001_s20  ;;  %28 = sbr.rel (!%p26_p5) target bundleno = 17 (0x11), region = 145 }
0x14c8   :  { %2246 = vsyncpa [#allocation6], 1 }
0x14c9   :  { %2248 = vsyncpa [#allocation6 + $0x1], 1 }
0x14ca   :  { %2249 = vsyncpa [#allocation7], 1 }
0x14cb   :  { %2251 = vsyncpa [#allocation7 + $0x1], 1 }

</bundles_post_ra>
